<compile_context>
chip_gen: v7x
topology: tpu7x:2x2x1
jax: 0.10.0
libtpu: 0.0.40
codegen_flags: <defaults>
</compile_context>

<pallas_src>
import functools

import jax
import jax.numpy as jnp
from jax.experimental import pallas as pl
from jax.experimental.pallas import tpu as pltpu

LANE = 128                      # pad HBM-stored output-N dims to this
_TILE_M = 512                   # row tile for the pipelined conv matmuls
_TILE_B = 256                   # batch tile for the fused conv3+fc kernel
_VMEM_LIMIT = 32 * 1024 * 1024  # fits v7x's 64 MiB/TC with headroom


def _round_up(x, m):
    return (x + m - 1) // m * m


# ----------------------------- Pallas kernels -------------------------------

def _matmul_bias_act_kernel(x_ref, w_ref, b_ref, o_ref, *, relu):
    # (TILE_M, K)bf16 @ (K, Npad)bf16 on the MXU, fp32 acc, fused bias(+ReLU).
    acc = jnp.dot(x_ref[...], w_ref[...], preferred_element_type=jnp.float32)
    acc = acc + b_ref[...]                     # (1, Npad) broadcasts over rows
    if relu:
        acc = jnp.maximum(acc, 0.0)
    o_ref[...] = acc.astype(o_ref.dtype)


def _conv3_fc_fused_kernel(p3_ref, w3_ref, b3_ref, w1_ref, b1_ref,
                           w2_ref, b2_ref, o_ref):
    """conv3 (per-tap matmuls) + ReLU + fc1 + ReLU + fc2, fully fused.

    p3_ref : (P, B, K3)  conv3 im2col patches, tap-major          (bf16)
    w3_ref : (K3, 64)    conv3 weight matrix (OC un-padded)       (bf16)
    w1_ref : (P, 64, H)  fc1 weight split per spatial tap         (bf16)
    The conv3 output / fc1 hidden never leave VMEM; only logits are stored.
    """
    n_taps = p3_ref.shape[0]          # h3*w3 -> small, static unroll
    b = p3_ref.shape[1]
    hidden = jnp.zeros((b, w1_ref.shape[2]), jnp.float32)
    for p in range(n_taps):
        c3 = jnp.dot(p3_ref[p], w3_ref[...],
                     preferred_element_type=jnp.float32)
        c3 = jnp.maximum(c3 + b3_ref[...], 0.0).astype(jnp.bfloat16)
        hidden = hidden + jnp.dot(c3, w1_ref[p],
                                  preferred_element_type=jnp.float32)
    h = jnp.maximum(hidden + b1_ref[...], 0.0).astype(jnp.bfloat16)
    out = jnp.dot(h, w2_ref[...], preferred_element_type=jnp.float32)
    o_ref[...] = (out + b2_ref[...]).astype(o_ref.dtype)


# ------------------------------ call wrappers --------------------------------

def _row_tiling(m, cap, multiple=16):
    # multiple=16: bf16 packs 16 rows per sublane group (review fix #7).
    tile = min(cap, _round_up(max(m, 1), multiple))
    return tile, _round_up(m, tile)


def _pad_rows(x, target, axis=0):
    if target == x.shape[axis]:
        return x
    pad = [(0, 0)] * x.ndim
    pad[axis] = (0, target - x.shape[axis])
    return jnp.pad(x, pad)


def matmul_bias_act(x, w, b, *, relu, out_dtype):
    """y = x @ w + b (optional ReLU). x:(M,K) w:(K,Npad)bf16 b:(1,Npad)f32."""
    m, k = x.shape
    kw_, n_pad = w.shape
    assert k == kw_, (k, kw_)
    tile_m, m_pad = _row_tiling(m, _TILE_M)
    x = _pad_rows(x.astype(jnp.bfloat16), m_pad)
    kernel = functools.partial(_matmul_bias_act_kernel, relu=relu)
    out = pl.pallas_call(
        kernel,
        out_shape=jax.ShapeDtypeStruct((m_pad, n_pad), out_dtype),
        grid=(m_pad // tile_m,),
        in_specs=[
            pl.BlockSpec((tile_m, k), lambda i: (i, 0)),
            pl.BlockSpec((k, n_pad), lambda i: (0, 0)),
            pl.BlockSpec((1, n_pad), lambda i: (0, 0)),
        ],
        out_specs=pl.BlockSpec((tile_m, n_pad), lambda i: (i, 0)),
        compiler_params=pltpu.CompilerParams(
            dimension_semantics=("parallel",),
            vmem_limit_bytes=_VMEM_LIMIT),
    )(x, w, b)
    return out[:m] if m_pad != m else out


def conv3_fc_fused(p3, w3, b3, w1, b1, w2, b2):
    """Fused conv3 + ReLU + fc1 + ReLU + fc2.  p3: (P, N, K3) tap-major."""
    n_taps, n, k3 = p3.shape
    hdim = w1.shape[2]
    a_pad = w2.shape[1]
    tile_b, n_pad = _row_tiling(n, _TILE_B)
    p3 = _pad_rows(p3.astype(jnp.bfloat16), n_pad, axis=1)
    out = pl.pallas_call(
        _conv3_fc_fused_kernel,
        out_shape=jax.ShapeDtypeStruct((n_pad, a_pad), jnp.float32),
        grid=(n_pad // tile_b,),
        in_specs=[
            pl.BlockSpec((n_taps, tile_b, k3), lambda i: (0, i, 0)),
            pl.BlockSpec((k3, w3.shape[1]), lambda i: (0, 0)),
            pl.BlockSpec((1, w3.shape[1]), lambda i: (0, 0)),
            pl.BlockSpec((n_taps, w1.shape[1], hdim), lambda i: (0, 0, 0)),
            pl.BlockSpec((1, hdim), lambda i: (0, 0)),
            pl.BlockSpec((hdim, a_pad), lambda i: (0, 0)),
            pl.BlockSpec((1, a_pad), lambda i: (0, 0)),
        ],
        out_specs=pl.BlockSpec((tile_b, a_pad), lambda i: (i, 0)),
        compiler_params=pltpu.CompilerParams(
            dimension_semantics=("parallel",),
            vmem_limit_bytes=_VMEM_LIMIT),
    )(p3, w3, b3, w1, b1, w2, b2)
    return out[:n] if n_pad != n else out


# --------------------------- conv-as-matmul glue ----------------------------

def _im2col_nhwc(x, kh, kw, stride):
    """x: (N,H,W,C) -> (N, OH, OW, KH*KW*C), column order (kh, kw, c)."""
    n, h, w, c = x.shape
    oh = (h - kh) // stride + 1
    ow = (w - kw) // stride + 1
    cols = []
    for i in range(kh):
        for j in range(kw):
            cols.append(
                x[:, i:i + stride * oh:stride, j:j + stride * ow:stride, :])
    return jnp.concatenate(cols, axis=-1), oh, ow


def conv2d_relu_nhwc(x, wmat, bias, kh, kw, stride):
    """NHWC valid conv + ReLU via the Pallas matmul kernel (OC lane-padded)."""
    n = x.shape[0]
    patches, oh, ow = _im2col_nhwc(x, kh, kw, stride)
    patches = patches.reshape(n * oh * ow, -1)
    out = matmul_bias_act(patches, wmat, bias, relu=True,
                          out_dtype=jnp.bfloat16)        # (N*OH*OW, OCpad)
    return out.reshape(n, oh, ow, wmat.shape[1])


def _im2col_taps_major(x, kh, kw, stride):
    """x: (N,H,W,C) -> (OH*OW, N, KH*KW*C); tap p = i*OW + j on the lead axis."""
    p, oh, ow = _im2col_nhwc(x, kh, kw, stride)
    n, k = x.shape[0], p.shape[-1]
    return p.transpose(1, 2, 0, 3).reshape(oh * ow, n, k), oh, ow


# ------------------------------- DQNSolver ----------------------------------

def _conv_out_hw(h, w):
    h1 = (h - 8) // 4 + 1; w1 = (w - 8) // 4 + 1
    h2 = (h1 - 4) // 2 + 1; w2 = (w1 - 4) // 2 + 1
    return h2 - 3 + 1, w2 - 3 + 1


def init_dqn_params(key, input_shape, n_actions):
    """PyTorch-layout parameters (same shapes/layout as the nn.Module)."""
    c_in, h, w = input_shape
    ks = jax.random.split(key, 10)

    def _init(k, shape, fan_in):
        scale = 1.0 / jnp.sqrt(jnp.float32(fan_in))
        return jax.random.uniform(k, shape, jnp.float32, -1.0, 1.0) * scale

    params = {
        "conv1_w": _init(ks[0], (32, c_in, 8, 8), c_in * 8 * 8),
        "conv1_b": _init(ks[1], (32,), c_in * 8 * 8),
        "conv2_w": _init(ks[2], (64, 32, 4, 4), 32 * 4 * 4),
        "conv2_b": _init(ks[3], (64,), 32 * 4 * 4),
        "conv3_w": _init(ks[4], (64, 64, 3, 3), 64 * 3 * 3),
        "conv3_b": _init(ks[5], (64,), 64 * 3 * 3),
    }
    h3, w3 = _conv_out_hw(h, w)
    conv_out_size = 64 * h3 * w3
    params["fc1_w"] = _init(ks[6], (512, conv_out_size), conv_out_size)
    params["fc1_b"] = _init(ks[7], (512,), conv_out_size)
    params["fc2_w"] = _init(ks[8], (n_actions, 512), 512)
    params["fc2_b"] = _init(ks[9], (n_actions,), 512)
    return params


def _pad_axis(a, axis, target):
    pad = [(0, 0)] * a.ndim
    pad[axis] = (0, target - a.shape[axis])
    return jnp.pad(a, pad)


def prepare_params(params, input_shape):
    """One-time weight re-layout: NHWC order, bf16, lane padding only where
    the corresponding activation is stored to HBM (real input channels for K)."""
    _, h, w = input_shape
    h3, w3 = _conv_out_hw(h, w)

    def conv_prep(wname, bname):
        wt = params[wname]                               # (OC, C, KH, KW)
        oc, c, kh, kw = wt.shape
        wt = wt.transpose(2, 3, 1, 0)                    # (KH, KW, C, OC)
        ocp = _round_up(oc, LANE)                        # lane-dense HBM store
        wt = _pad_axis(wt, 3, ocp)
        wmat = wt.reshape(kh * kw * c, ocp).astype(jnp.bfloat16)
        bias = _pad_axis(params[bname], 0, ocp).reshape(1, ocp)
        return wmat, bias.astype(jnp.float32)

    p = {}
    # conv1/conv2 outputs go to HBM: keep OC padded to 128 (unmasked vst).
    # TODO(synk): benchmark OC=32/64 (masked store, 4x/2x less write traffic)
    # vs. the padded variant, now that the padding no longer feeds downstream K.
    p["conv1_w"], p["conv1_b"] = conv_prep("conv1_w", "conv1_b")
    p["conv2_w"], p["conv2_b"] = conv_prep("conv2_w", "conv2_b")

    # conv3 output never leaves VMEM (fused kernel): no OC padding at all.
    p["conv3_w"] = (params["conv3_w"].transpose(2, 3, 1, 0)
                    .reshape(3 * 3 * 64, 64).astype(jnp.bfloat16))
    p["conv3_b"] = params["conv3_b"].reshape(1, 64).astype(jnp.float32)

    # fc1: PyTorch columns are ordered (C=64, H3, W3).  Split per spatial tap
    # p = i*W3 + j so the fused kernel contracts over (tap, channel) with
    # contiguous slices and no in-kernel reshape:
    #   fc1_w_taps[p, c, :] = fc1_w[:, c*H3*W3 + i*W3 + j]
    fw = params["fc1_w"].reshape(512, 64, h3, w3).transpose(2, 3, 1, 0)
    p["fc1_w"] = fw.reshape(h3 * w3, 64, 512).astype(jnp.bfloat16)
    p["fc1_b"] = params["fc1_b"].reshape(1, 512).astype(jnp.float32)

    n_actions = params["fc2_w"].shape[0]
    ap = _round_up(n_actions, LANE)
    p["fc2_w"] = _pad_axis(params["fc2_w"].T, 1, ap).astype(jnp.bfloat16)
    p["fc2_b"] = _pad_axis(params["fc2_b"], 0, ap).reshape(1, ap).astype(
        jnp.float32)
    return p


def dqn_forward(prepared, x, n_actions):
    """x: (N, C, H, W) NCHW float32 -> (N, n_actions) float32."""
    x = jnp.transpose(x, (0, 2, 3, 1)).astype(jnp.bfloat16)   # NHWC, bf16 once
    x = conv2d_relu_nhwc(x, prepared["conv1_w"], prepared["conv1_b"], 8, 8, 4)
    x = x[..., :32]                   # fix #1: drop padded channels before K
    x = conv2d_relu_nhwc(x, prepared["conv2_w"], prepared["conv2_b"], 4, 4, 2)
    x = x[..., :64]                   # fix #1: drop padded channels before K
    # TODO(synk): move patch extraction in-kernel (strided window reads /
    # manual DMA gather) to avoid materializing im2col matrices in HBM.
    p3, _, _ = _im2col_taps_major(x, 3, 3, 1)                 # (P, N, 576)
    logits = conv3_fc_fused(p3, prepared["conv3_w"], prepared["conv3_b"],
                            prepared["fc1_w"], prepared["fc1_b"],
                            prepared["fc2_w"], prepared["fc2_b"])
    return logits[:, :n_actions]


# ------------------------- pure-JAX fp32 reference ---------------------------

def dqn_reference(params, x):
    """Reference matching the PyTorch module (NCHW, fp32 weights)."""
    def conv(y, wname, bname, stride):
        y = jax.lax.conv_general_dilated(
            y, params[wname], window_strides=(stride, stride), padding="VALID",
            dimension_numbers=("NCHW", "OIHW", "NCHW"))
        return jax.nn.relu(y + params[bname][None, :, None, None])
    y = conv(x, "conv1_w", "conv1_b", 4)
    y = conv(y, "conv2_w", "conv2_b", 2)
    y = conv(y, "conv3_w", "conv3_b", 1)
    flat = y.reshape(y.shape[0], -1)            # NCHW flatten (c, h, w) order
    h = jax.nn.relu(flat @ params["fc1_w"].T + params["fc1_b"])
    return h @ params["fc2_w"].T + params["fc2_b"]


if __name__ == "__main__":
    # Small-but-valid shapes: 44x44 input -> conv spatial sizes 10 -> 4 -> 2,
    # so the fused kernel's tap loop (P = 4) and fc1 permutation are exercised.
    batch, channels, spatial, n_actions = 2, 4, 44, 4
    input_shape = (channels, spatial, spatial)

    key = jax.random.PRNGKey(0)
    k_params, k_x = jax.random.split(key)
    params = init_dqn_params(k_params, input_shape, n_actions)
    prepared = prepare_params(params, input_shape)
    x = jax.random.normal(k_x, (batch, channels, spatial, spatial), jnp.float32)

    fwd = jax.jit(lambda p, xx: dqn_forward(p, xx, n_actions))
    q_values = fwd(prepared, x)
    jax.block_until_ready(q_values)
    assert q_values.shape == (batch, n_actions), q_values.shape
    assert q_values.dtype == jnp.float32

    # Loose bf16-level sanity check against the fp32-layout reference.
    ref = jax.jit(dqn_reference)(params, x)
    jax.block_until_ready(ref)
    err = jnp.max(jnp.abs(q_values - ref)) / (jnp.max(jnp.abs(ref)) + 1e-6)
    assert float(err) < 0.1, float(err)
    print("KERNEL_OK")
</pallas_src>

<mosaic_0001>
module attributes {stable_mosaic.version = 11 : i64} {
  func.func @_matmul_bias_act_kernel(%arg0: i32, %arg1: memref<208x256xbf16, #tpu.memory_space<vmem>>, %arg2: memref<256x128xbf16, #tpu.memory_space<vmem>>, %arg3: memref<1x128xf32, #tpu.memory_space<vmem>>, %arg4: memref<208x128xbf16, #tpu.memory_space<vmem>>) attributes {dimension_semantics = [#tpu.dimension_semantics<parallel>], iteration_bounds = array<i64: 1>, scalar_prefetch = 0 : i64, scratch_operands = 0 : i64, tpu.core_type = #tpu.core_type<tc>, window_params = [{transform_indices = @transform_0, window_bounds = array<i64: 208, 256>}, {pipeline_mode = #tpu.pipeline_mode<synchronous>, transform_indices = @transform_1, window_bounds = array<i64: 256, 128>}, {pipeline_mode = #tpu.pipeline_mode<synchronous>, transform_indices = @transform_2, window_bounds = array<i64: 1, 128>}, {transform_indices = @transform_3, window_bounds = array<i64: 208, 128>}]} {
    %c0 = arith.constant 0 : index
    %c0_0 = arith.constant 0 : index
    %0 = vector.load %arg1[%c0, %c0_0] : memref<208x256xbf16, #tpu.memory_space<vmem>>, vector<208x256xbf16>
    %c0_1 = arith.constant 0 : index
    %c0_2 = arith.constant 0 : index
    %1 = vector.load %arg2[%c0_1, %c0_2] : memref<256x128xbf16, #tpu.memory_space<vmem>>, vector<256x128xbf16>
    %cst = arith.constant dense<0.000000e+00> : vector<208x128xf32>
    %2 = tpu.matmul %0, %1, %cst {dimension_numbers = #tpu.dot_dimension_numbers<[1], [0], [0], [1], [0, 0, 1, 1], [], []>} : vector<208x256xbf16>, vector<256x128xbf16>, vector<208x128xf32> -> vector<208x128xf32>
    %c0_3 = arith.constant 0 : index
    %c0_4 = arith.constant 0 : index
    %3 = vector.load %arg3[%c0_3, %c0_4] : memref<1x128xf32, #tpu.memory_space<vmem>>, vector<1x128xf32>
    %4 = vector.broadcast %3 : vector<1x128xf32> to vector<208x128xf32>
    %5 = arith.addf %2, %4 : vector<208x128xf32>
    %cst_5 = arith.constant 0.000000e+00 : f32
    %6 = vector.broadcast %cst_5 : f32 to vector<208x128xf32>
    %7 = arith.maximumf %5, %6 : vector<208x128xf32>
    %8 = arith.truncf %7 : vector<208x128xf32> to vector<208x128xbf16>
    %c0_6 = arith.constant 0 : index
    %c0_7 = arith.constant 0 : index
    %9 = vector.load %arg4[%c0_6, %c0_7] : memref<208x128xbf16, #tpu.memory_space<vmem>>, vector<208x128xbf16>
    tpu.vector_store %arg4[%c0_6, %c0_7], %8 {strides = array<i32>} : memref<208x128xbf16, #tpu.memory_space<vmem>>, vector<208x128xbf16>,
    return
  }
  func.func @transform_0(%arg0: i32) -> (i32, i32) {
    %c0_i32 = arith.constant 0 : i32
    %c0_i32_0 = arith.constant 0 : i32
    return %arg0, %c0_i32 : i32, i32
  }
  func.func @transform_1(%arg0: i32) -> (i32, i32) {
    %c0_i32 = arith.constant 0 : i32
    %c0_i32_0 = arith.constant 0 : i32
    %c0_i32_1 = arith.constant 0 : i32
    return %c0_i32, %c0_i32_0 : i32, i32
  }
  func.func @transform_2(%arg0: i32) -> (i32, i32) {
    %c0_i32 = arith.constant 0 : i32
    %c0_i32_0 = arith.constant 0 : i32
    %c0_i32_1 = arith.constant 0 : i32
    return %c0_i32, %c0_i32_0 : i32, i32
  }
  func.func @transform_3(%arg0: i32) -> (i32, i32) {
    %c0_i32 = arith.constant 0 : i32
    %c0_i32_0 = arith.constant 0 : i32
    return %arg0, %c0_i32 : i32, i32
  }
}

module attributes {stable_mosaic.version = 11 : i64} {
  func.func @_matmul_bias_act_kernel(%arg0: i32, %arg1: memref<32x512xbf16, #tpu.memory_space<vmem>>, %arg2: memref<512x128xbf16, #tpu.memory_space<vmem>>, %arg3: memref<1x128xf32, #tpu.memory_space<vmem>>, %arg4: memref<32x128xbf16, #tpu.memory_space<vmem>>) attributes {dimension_semantics = [#tpu.dimension_semantics<parallel>], iteration_bounds = array<i64: 1>, scalar_prefetch = 0 : i64, scratch_operands = 0 : i64, tpu.core_type = #tpu.core_type<tc>, window_params = [{transform_indices = @transform_0, window_bounds = array<i64: 32, 512>}, {pipeline_mode = #tpu.pipeline_mode<synchronous>, transform_indices = @transform_1, window_bounds = array<i64: 512, 128>}, {pipeline_mode = #tpu.pipeline_mode<synchronous>, transform_indices = @transform_2, window_bounds = array<i64: 1, 128>}, {transform_indices = @transform_3, window_bounds = array<i64: 32, 128>}]} {
    %c0 = arith.constant 0 : index
    %c0_0 = arith.constant 0 : index
    %0 = vector.load %arg1[%c0, %c0_0] : memref<32x512xbf16, #tpu.memory_space<vmem>>, vector<32x512xbf16>
    %c0_1 = arith.constant 0 : index
    %c0_2 = arith.constant 0 : index
    %1 = vector.load %arg2[%c0_1, %c0_2] : memref<512x128xbf16, #tpu.memory_space<vmem>>, vector<512x128xbf16>
    %cst = arith.constant dense<0.000000e+00> : vector<32x128xf32>
    %2 = tpu.matmul %0, %1, %cst {dimension_numbers = #tpu.dot_dimension_numbers<[1], [0], [0], [1], [0, 0, 1, 1], [], []>} : vector<32x512xbf16>, vector<512x128xbf16>, vector<32x128xf32> -> vector<32x128xf32>
    %c0_3 = arith.constant 0 : index
    %c0_4 = arith.constant 0 : index
    %3 = vector.load %arg3[%c0_3, %c0_4] : memref<1x128xf32, #tpu.memory_space<vmem>>, vector<1x128xf32>
    %4 = vector.broadcast %3 : vector<1x128xf32> to vector<32x128xf32>
    %5 = arith.addf %2, %4 : vector<32x128xf32>
    %cst_5 = arith.constant 0.000000e+00 : f32
    %6 = vector.broadcast %cst_5 : f32 to vector<32x128xf32>
    %7 = arith.maximumf %5, %6 : vector<32x128xf32>
    %8 = arith.truncf %7 : vector<32x128xf32> to vector<32x128xbf16>
    %c0_6 = arith.constant 0 : index
    %c0_7 = arith.constant 0 : index
    %9 = vector.load %arg4[%c0_6, %c0_7] : memref<32x128xbf16, #tpu.memory_space<vmem>>, vector<32x128xbf16>
    tpu.vector_store %arg4[%c0_6, %c0_7], %8 {strides = array<i32>} : memref<32x128xbf16, #tpu.memory_space<vmem>>, vector<32x128xbf16>,
    return
  }
  func.func @transform_0(%arg0: i32) -> (i32, i32) {
    %c0_i32 = arith.constant 0 : i32
    %c0_i32_0 = arith.constant 0 : i32
    return %arg0, %c0_i32 : i32, i32
  }
  func.func @transform_1(%arg0: i32) -> (i32, i32) {
    %c0_i32 = arith.constant 0 : i32
    %c0_i32_0 = arith.constant 0 : i32
    %c0_i32_1 = arith.constant 0 : i32
    return %c0_i32, %c0_i32_0 : i32, i32
  }
  func.func @transform_2(%arg0: i32) -> (i32, i32) {
    %c0_i32 = arith.constant 0 : i32
    %c0_i32_0 = arith.constant 0 : i32
    %c0_i32_1 = arith.constant 0 : i32
    return %c0_i32, %c0_i32_0 : i32, i32
  }
  func.func @transform_3(%arg0: i32) -> (i32, i32) {
    %c0_i32 = arith.constant 0 : i32
    %c0_i32_0 = arith.constant 0 : i32
    return %arg0, %c0_i32 : i32, i32
  }
}

module attributes {stable_mosaic.version = 11 : i64} {
  func.func @_conv3_fc_fused_kernel(%arg0: i32, %arg1: memref<4x16x576xbf16, #tpu.memory_space<vmem>>, %arg2: memref<576x64xbf16, #tpu.memory_space<vmem>>, %arg3: memref<1x64xf32, #tpu.memory_space<vmem>>, %arg4: memref<4x64x512xbf16, #tpu.memory_space<vmem>>, %arg5: memref<1x512xf32, #tpu.memory_space<vmem>>, %arg6: memref<512x128xbf16, #tpu.memory_space<vmem>>, %arg7: memref<1x128xf32, #tpu.memory_space<vmem>>, %arg8: memref<16x128xf32, #tpu.memory_space<vmem>>) attributes {dimension_semantics = [#tpu.dimension_semantics<parallel>], iteration_bounds = array<i64: 1>, scalar_prefetch = 0 : i64, scratch_operands = 0 : i64, tpu.core_type = #tpu.core_type<tc>, window_params = [{transform_indices = @transform_0, window_bounds = array<i64: 4, 16, 576>}, {pipeline_mode = #tpu.pipeline_mode<synchronous>, transform_indices = @transform_1, window_bounds = array<i64: 576, 64>}, {pipeline_mode = #tpu.pipeline_mode<synchronous>, transform_indices = @transform_2, window_bounds = array<i64: 1, 64>}, {pipeline_mode = #tpu.pipeline_mode<synchronous>, transform_indices = @transform_3, window_bounds = array<i64: 4, 64, 512>}, {pipeline_mode = #tpu.pipeline_mode<synchronous>, transform_indices = @transform_4, window_bounds = array<i64: 1, 512>}, {pipeline_mode = #tpu.pipeline_mode<synchronous>, transform_indices = @transform_5, window_bounds = array<i64: 512, 128>}, {pipeline_mode = #tpu.pipeline_mode<synchronous>, transform_indices = @transform_6, window_bounds = array<i64: 1, 128>}, {transform_indices = @transform_7, window_bounds = array<i64: 16, 128>}]} {
    %cst = arith.constant 0.000000e+00 : f32
    %0 = vector.broadcast %cst : f32 to vector<16x512xf32>
    %c0 = arith.constant 0 : index
    %c0_0 = arith.constant 0 : index
    %c0_1 = arith.constant 0 : index
    %1 = vector.load %arg1[%c0, %c0_0, %c0_1] : memref<4x16x576xbf16, #tpu.memory_space<vmem>>, vector<1x16x576xbf16>
    %2 = vector.shape_cast %1 : vector<1x16x576xbf16> to vector<16x576xbf16>
    %c0_2 = arith.constant 0 : index
    %c0_3 = arith.constant 0 : index
    %3 = vector.load %arg2[%c0_2, %c0_3] : memref<576x64xbf16, #tpu.memory_space<vmem>>, vector<576x64xbf16>
    %cst_4 = arith.constant dense<0.000000e+00> : vector<16x64xf32>
    %4 = tpu.matmul %2, %3, %cst_4 {dimension_numbers = #tpu.dot_dimension_numbers<[1], [0], [0], [1], [0, 0, 1, 1], [], []>} : vector<16x576xbf16>, vector<576x64xbf16>, vector<16x64xf32> -> vector<16x64xf32>
    %c0_5 = arith.constant 0 : index
    %c0_6 = arith.constant 0 : index
    %5 = vector.load %arg3[%c0_5, %c0_6] : memref<1x64xf32, #tpu.memory_space<vmem>>, vector<1x64xf32>
    %6 = vector.broadcast %5 : vector<1x64xf32> to vector<16x64xf32>
    %7 = arith.addf %4, %6 : vector<16x64xf32>
    %cst_7 = arith.constant 0.000000e+00 : f32
    %8 = vector.broadcast %cst_7 : f32 to vector<16x64xf32>
    %9 = arith.maximumf %7, %8 : vector<16x64xf32>
    %10 = arith.truncf %9 : vector<16x64xf32> to vector<16x64xbf16>
    %c0_8 = arith.constant 0 : index
    %c0_9 = arith.constant 0 : index
    %c0_10 = arith.constant 0 : index
    %11 = vector.load %arg4[%c0_8, %c0_9, %c0_10] : memref<4x64x512xbf16, #tpu.memory_space<vmem>>, vector<1x64x512xbf16>
    %12 = vector.shape_cast %11 : vector<1x64x512xbf16> to vector<64x512xbf16>
    %cst_11 = arith.constant dense<0.000000e+00> : vector<16x512xf32>
    %13 = tpu.matmul %10, %12, %cst_11 {dimension_numbers = #tpu.dot_dimension_numbers<[1], [0], [0], [1], [0, 0, 1, 1], [], []>} : vector<16x64xbf16>, vector<64x512xbf16>, vector<16x512xf32> -> vector<16x512xf32>
    %14 = arith.addf %0, %13 : vector<16x512xf32>
    %c1 = arith.constant 1 : index
    %c0_12 = arith.constant 0 : index
    %c0_13 = arith.constant 0 : index
    %15 = vector.load %arg1[%c1, %c0_12, %c0_13] : memref<4x16x576xbf16, #tpu.memory_space<vmem>>, vector<1x16x576xbf16>
    %16 = vector.shape_cast %15 : vector<1x16x576xbf16> to vector<16x576xbf16>
    %c0_14 = arith.constant 0 : index
    %c0_15 = arith.constant 0 : index
    %17 = vector.load %arg2[%c0_14, %c0_15] : memref<576x64xbf16, #tpu.memory_space<vmem>>, vector<576x64xbf16>
    %cst_16 = arith.constant dense<0.000000e+00> : vector<16x64xf32>
    %18 = tpu.matmul %16, %17, %cst_16 {dimension_numbers = #tpu.dot_dimension_numbers<[1], [0], [0], [1], [0, 0, 1, 1], [], []>} : vector<16x576xbf16>, vector<576x64xbf16>, vector<16x64xf32> -> vector<16x64xf32>
    %c0_17 = arith.constant 0 : index
    %c0_18 = arith.constant 0 : index
    %19 = vector.load %arg3[%c0_17, %c0_18] : memref<1x64xf32, #tpu.memory_space<vmem>>, vector<1x64xf32>
    %20 = vector.broadcast %19 : vector<1x64xf32> to vector<16x64xf32>
    %21 = arith.addf %18, %20 : vector<16x64xf32>
    %cst_19 = arith.constant 0.000000e+00 : f32
    %22 = vector.broadcast %cst_19 : f32 to vector<16x64xf32>
    %23 = arith.maximumf %21, %22 : vector<16x64xf32>
    %24 = arith.truncf %23 : vector<16x64xf32> to vector<16x64xbf16>
    %c1_20 = arith.constant 1 : index
    %c0_21 = arith.constant 0 : index
    %c0_22 = arith.constant 0 : index
    %25 = vector.load %arg4[%c1_20, %c0_21, %c0_22] : memref<4x64x512xbf16, #tpu.memory_space<vmem>>, vector<1x64x512xbf16>
    %26 = vector.shape_cast %25 : vector<1x64x512xbf16> to vector<64x512xbf16>
    %cst_23 = arith.constant dense<0.000000e+00> : vector<16x512xf32>
    %27 = tpu.matmul %24, %26, %cst_23 {dimension_numbers = #tpu.dot_dimension_numbers<[1], [0], [0], [1], [0, 0, 1, 1], [], []>} : vector<16x64xbf16>, vector<64x512xbf16>, vector<16x512xf32> -> vector<16x512xf32>
    %28 = arith.addf %14, %27 : vector<16x512xf32>
    %c2 = arith.constant 2 : index
    %c0_24 = arith.constant 0 : index
    %c0_25 = arith.constant 0 : index
    %29 = vector.load %arg1[%c2, %c0_24, %c0_25] : memref<4x16x576xbf16, #tpu.memory_space<vmem>>, vector<1x16x576xbf16>
    %30 = vector.shape_cast %29 : vector<1x16x576xbf16> to vector<16x576xbf16>
    %c0_26 = arith.constant 0 : index
    %c0_27 = arith.constant 0 : index
    %31 = vector.load %arg2[%c0_26, %c0_27] : memref<576x64xbf16, #tpu.memory_space<vmem>>, vector<576x64xbf16>
    %cst_28 = arith.constant dense<0.000000e+00> : vector<16x64xf32>
    %32 = tpu.matmul %30, %31, %cst_28 {dimension_numbers = #tpu.dot_dimension_numbers<[1], [0], [0], [1], [0, 0, 1, 1], [], []>} : vector<16x576xbf16>, vector<576x64xbf16>, vector<16x64xf32> -> vector<16x64xf32>
    %c0_29 = arith.constant 0 : index
    %c0_30 = arith.constant 0 : index
    %33 = vector.load %arg3[%c0_29, %c0_30] : memref<1x64xf32, #tpu.memory_space<vmem>>, vector<1x64xf32>
    %34 = vector.broadcast %33 : vector<1x64xf32> to vector<16x64xf32>
    %35 = arith.addf %32, %34 : vector<16x64xf32>
    %cst_31 = arith.constant 0.000000e+00 : f32
    %36 = vector.broadcast %cst_31 : f32 to vector<16x64xf32>
    %37 = arith.maximumf %35, %36 : vector<16x64xf32>
    %38 = arith.truncf %37 : vector<16x64xf32> to vector<16x64xbf16>
    %c2_32 = arith.constant 2 : index
    %c0_33 = arith.constant 0 : index
    %c0_34 = arith.constant 0 : index
    %39 = vector.load %arg4[%c2_32, %c0_33, %c0_34] : memref<4x64x512xbf16, #tpu.memory_space<vmem>>, vector<1x64x512xbf16>
    %40 = vector.shape_cast %39 : vector<1x64x512xbf16> to vector<64x512xbf16>
    %cst_35 = arith.constant dense<0.000000e+00> : vector<16x512xf32>
    %41 = tpu.matmul %38, %40, %cst_35 {dimension_numbers = #tpu.dot_dimension_numbers<[1], [0], [0], [1], [0, 0, 1, 1], [], []>} : vector<16x64xbf16>, vector<64x512xbf16>, vector<16x512xf32> -> vector<16x512xf32>
    %42 = arith.addf %28, %41 : vector<16x512xf32>
    %c3 = arith.constant 3 : index
    %c0_36 = arith.constant 0 : index
    %c0_37 = arith.constant 0 : index
    %43 = vector.load %arg1[%c3, %c0_36, %c0_37] : memref<4x16x576xbf16, #tpu.memory_space<vmem>>, vector<1x16x576xbf16>
    %44 = vector.shape_cast %43 : vector<1x16x576xbf16> to vector<16x576xbf16>
    %c0_38 = arith.constant 0 : index
    %c0_39 = arith.constant 0 : index
    %45 = vector.load %arg2[%c0_38, %c0_39] : memref<576x64xbf16, #tpu.memory_space<vmem>>, vector<576x64xbf16>
    %cst_40 = arith.constant dense<0.000000e+00> : vector<16x64xf32>
    %46 = tpu.matmul %44, %45, %cst_40 {dimension_numbers = #tpu.dot_dimension_numbers<[1], [0], [0], [1], [0, 0, 1, 1], [], []>} : vector<16x576xbf16>, vector<576x64xbf16>, vector<16x64xf32> -> vector<16x64xf32>
    %c0_41 = arith.constant 0 : index
    %c0_42 = arith.constant 0 : index
    %47 = vector.load %arg3[%c0_41, %c0_42] : memref<1x64xf32, #tpu.memory_space<vmem>>, vector<1x64xf32>
    %48 = vector.broadcast %47 : vector<1x64xf32> to vector<16x64xf32>
    %49 = arith.addf %46, %48 : vector<16x64xf32>
    %cst_43 = arith.constant 0.000000e+00 : f32
    %50 = vector.broadcast %cst_43 : f32 to vector<16x64xf32>
    %51 = arith.maximumf %49, %50 : vector<16x64xf32>
    %52 = arith.truncf %51 : vector<16x64xf32> to vector<16x64xbf16>
    %c3_44 = arith.constant 3 : index
    %c0_45 = arith.constant 0 : index
    %c0_46 = arith.constant 0 : index
    %53 = vector.load %arg4[%c3_44, %c0_45, %c0_46] : memref<4x64x512xbf16, #tpu.memory_space<vmem>>, vector<1x64x512xbf16>
    %54 = vector.shape_cast %53 : vector<1x64x512xbf16> to vector<64x512xbf16>
    %cst_47 = arith.constant dense<0.000000e+00> : vector<16x512xf32>
    %55 = tpu.matmul %52, %54, %cst_47 {dimension_numbers = #tpu.dot_dimension_numbers<[1], [0], [0], [1], [0, 0, 1, 1], [], []>} : vector<16x64xbf16>, vector<64x512xbf16>, vector<16x512xf32> -> vector<16x512xf32>
    %56 = arith.addf %42, %55 : vector<16x512xf32>
    %c0_48 = arith.constant 0 : index
    %c0_49 = arith.constant 0 : index
    %57 = vector.load %arg5[%c0_48, %c0_49] : memref<1x512xf32, #tpu.memory_space<vmem>>, vector<1x512xf32>
    %58 = vector.broadcast %57 : vector<1x512xf32> to vector<16x512xf32>
    %59 = arith.addf %56, %58 : vector<16x512xf32>
    %cst_50 = arith.constant 0.000000e+00 : f32
    %60 = vector.broadcast %cst_50 : f32 to vector<16x512xf32>
    %61 = arith.maximumf %59, %60 : vector<16x512xf32>
    %62 = arith.truncf %61 : vector<16x512xf32> to vector<16x512xbf16>
    %c0_51 = arith.constant 0 : index
    %c0_52 = arith.constant 0 : index
    %63 = vector.load %arg6[%c0_51, %c0_52] : memref<512x128xbf16, #tpu.memory_space<vmem>>, vector<512x128xbf16>
    %cst_53 = arith.constant dense<0.000000e+00> : vector<16x128xf32>
    %64 = tpu.matmul %62, %63, %cst_53 {dimension_numbers = #tpu.dot_dimension_numbers<[1], [0], [0], [1], [0, 0, 1, 1], [], []>} : vector<16x512xbf16>, vector<512x128xbf16>, vector<16x128xf32> -> vector<16x128xf32>
    %c0_54 = arith.constant 0 : index
    %c0_55 = arith.constant 0 : index
    %65 = vector.load %arg7[%c0_54, %c0_55] : memref<1x128xf32, #tpu.memory_space<vmem>>, vector<1x128xf32>
    %66 = vector.broadcast %65 : vector<1x128xf32> to vector<16x128xf32>
    %67 = arith.addf %64, %66 : vector<16x128xf32>
    %c0_56 = arith.constant 0 : index
    %c0_57 = arith.constant 0 : index
    %68 = vector.load %arg8[%c0_56, %c0_57] : memref<16x128xf32, #tpu.memory_space<vmem>>, vector<16x128xf32>
    tpu.vector_store %arg8[%c0_56, %c0_57], %67 {strides = array<i32>} : memref<16x128xf32, #tpu.memory_space<vmem>>, vector<16x128xf32>,
    return
  }
  func.func @transform_0(%arg0: i32) -> (i32, i32, i32) {
    %c0_i32 = arith.constant 0 : i32
    %c0_i32_0 = arith.constant 0 : i32
    %c0_i32_1 = arith.constant 0 : i32
    return %c0_i32, %arg0, %c0_i32_0 : i32, i32, i32
  }
  func.func @transform_1(%arg0: i32) -> (i32, i32) {
    %c0_i32 = arith.constant 0 : i32
    %c0_i32_0 = arith.constant 0 : i32
    %c0_i32_1 = arith.constant 0 : i32
    return %c0_i32, %c0_i32_0 : i32, i32
  }
  func.func @transform_2(%arg0: i32) -> (i32, i32) {
    %c0_i32 = arith.constant 0 : i32
    %c0_i32_0 = arith.constant 0 : i32
    %c0_i32_1 = arith.constant 0 : i32
    return %c0_i32, %c0_i32_0 : i32, i32
  }
  func.func @transform_3(%arg0: i32) -> (i32, i32, i32) {
    %c0_i32 = arith.constant 0 : i32
    %c0_i32_0 = arith.constant 0 : i32
    %c0_i32_1 = arith.constant 0 : i32
    %c0_i32_2 = arith.constant 0 : i32
    return %c0_i32, %c0_i32_0, %c0_i32_1 : i32, i32, i32
  }
  func.func @transform_4(%arg0: i32) -> (i32, i32) {
    %c0_i32 = arith.constant 0 : i32
    %c0_i32_0 = arith.constant 0 : i32
    %c0_i32_1 = arith.constant 0 : i32
    return %c0_i32, %c0_i32_0 : i32, i32
  }
  func.func @transform_5(%arg0: i32) -> (i32, i32) {
    %c0_i32 = arith.constant 0 : i32
    %c0_i32_0 = arith.constant 0 : i32
    %c0_i32_1 = arith.constant 0 : i32
    return %c0_i32, %c0_i32_0 : i32, i32
  }
  func.func @transform_6(%arg0: i32) -> (i32, i32) {
    %c0_i32 = arith.constant 0 : i32
    %c0_i32_0 = arith.constant 0 : i32
    %c0_i32_1 = arith.constant 0 : i32
    return %c0_i32, %c0_i32_0 : i32, i32
  }
  func.func @transform_7(%arg0: i32) -> (i32, i32) {
    %c0_i32 = arith.constant 0 : i32
    %c0_i32_0 = arith.constant 0 : i32
    return %arg0, %c0_i32 : i32, i32
  }
}

</mosaic_0001>

<bundles_post_ra>
// kernel: _lambda_.3
= control target key start
LH: loop header
LB: loop body
LE: loop exit
PB: predicated region body
PF: predicated region fallthrough
CT: control target
= control target key end

     0   :  { %s1156_s1 = inlined_call_operand.vmem [shape: bf16[256,128], index: 1, kind: input, shape index: {}]   ;;  %s1157_s0 = inlined_call_operand.vmem [shape: bf16[208,256], index: 0, kind: input, shape index: {}]   ;;  %s1158_s2 = inlined_call_operand.vmem [shape: f32[1,128], index: 2, kind: input, shape index: {}]   ;;  %s1159_s3 = inlined_call_operand.vmem [shape: bf16[208,128], index: 3, kind: output, shape index: {}]  }
   0x1   :  { %v885_v0 = vld [vmem:[%s1156_s1 + $0x40] sm:$0xff]   ;;  %v887_v2 = vld [vmem:[%s1156_s1 + $0x48] sm:$0xff]   ;;  %v889_v4 = vld [vmem:[%s1156_s1 + $0x50] sm:$0xff]  }
   0x2   :  { %v886_v1 = vld [vmem:[%s1156_s1] sm:$0xff]   ;;  %775 = vmatprep.subr.bf16.mxu0 %v885_v0  ;;  %869 = vmatprep.subr.bf16.mxu1 %v885_v0  ;;  %v888_v3 = vld [vmem:[%s1156_s1 + $0x8] sm:$0xff]   ;;  %v890_v5 = vld [vmem:[%s1156_s1 + $0x10] sm:$0xff]  }
   0x3   :  { %776 = vmatpush3.bf16.msra.mxu0 %v886_v1  ;;  %877 = vmatpush3.bf16.msra.mxu1 %v886_v1  ;;  %v891_v6 = vld [vmem:[%s1156_s1 + $0x58] sm:$0xff]   ;;  %v893_v8 = vld [vmem:[%s1156_s1 + $0x60] sm:$0xff]   ;;  %v895_v10 = vld [vmem:[%s1156_s1 + $0x68] sm:$0xff]  }
   0x4   :  { %777 = vmatprep.subr.bf16.mxu0 %v887_v2  ;;  %870 = vmatprep.subr.bf16.mxu1 %v887_v2  ;;  %v892_v7 = vld [vmem:[%s1156_s1 + $0x18] sm:$0xff]   ;;  %v894_v9 = vld [vmem:[%s1156_s1 + $0x20] sm:$0xff]   ;;  %v896_v13 = vld [vmem:[%s1156_s1 + $0x28] sm:$0xff]  }
   0x5   :  { %v903_v11 = vld [vmem:[%s1157_s0 + $0x4] ss:$8 sps:$4 sm:$0xff]   ;;  %v906_v12 = vld [vmem:[%s1157_s0 + $0x74] ss:$8 sps:$4 sm:$0xff]   ;;  %v901_v18 = vld [vmem:[%s1157_s0] ss:$8 sps:$4 sm:$0xff]  }
   0x6   :  { %v897_v14 = vld [vmem:[%s1156_s1 + $0x70] sm:$0xff]   ;;  %338 = vmatprep.mubr.bf16.mxu0 %v903_v11  ;;  %394 = vmatprep.mubr.bf16.mxu1 %v906_v12  ;;  %v899_v16 = vld [vmem:[%s1156_s1 + $0x78] sm:$0xff]   ;;  %v910_v21 = vld [vmem:[%s1157_s0 + $0x84] ss:$8 sps:$4 sm:$0xff]  }
   0x7   :  { %778 = vmatpush3.bf16.msra.mxu0 %v888_v3  ;;  %878 = vmatpush3.bf16.msra.mxu1 %v888_v3  ;;  %v898_v15 = vld [vmem:[%s1156_s1 + $0x30] sm:$0xff]   ;;  %v900_v17 = vld [vmem:[%s1156_s1 + $0x38] sm:$0xff]   ;;  %v912_v23 = vld [vmem:[%s1157_s0 + $0x80] ss:$8 sps:$4 sm:$0xff]  }
   0x8   :  { %779 = vmatprep.subr.bf16.mxu0 %v889_v4  ;;  %871 = vmatprep.subr.bf16.mxu1 %v889_v4  ;;  %v904_v19 = vld [vmem:[%s1157_s0 + $0x70] ss:$8 sps:$4 sm:$0xff]   ;;  %v907_v20 = vld [vmem:[%s1157_s0 + $0x14] ss:$8 sps:$4 sm:$0xff]   ;;  %v913_v24 = vld [vmem:[%s1157_s0 + $0x24] ss:$8 sps:$4 sm:$0xff]  }
   0x9   :  { %v909_v22 = vld [vmem:[%s1157_s0 + $0x10] ss:$8 sps:$4 sm:$0xff]   ;;  %v916_v25 = vld [vmem:[%s1157_s0 + $0x94] ss:$8 sps:$4 sm:$0xff]   ;;  %v915_v26 = vld [vmem:[%s1157_s0 + $0x20] ss:$8 sps:$4 sm:$0xff]  }
   0xa   :  { %v918_v27 = vld [vmem:[%s1157_s0 + $0x90] ss:$8 sps:$4 sm:$0xff]   ;;  %v919_v28 = vld [vmem:[%s1157_s0 + $0x34] ss:$8 sps:$4 sm:$0xff]   ;;  %v922_v29 = vld [vmem:[%s1157_s0 + $0xa4] ss:$8 sps:$4 sm:$0xff]  }
   0xb   :  { %780 = vmatpush3.bf16.msra.mxu0 %v890_v5  ;;  %879 = vmatpush3.bf16.msra.mxu1 %v890_v5  ;;  %v921_v30 = vld [vmem:[%s1157_s0 + $0x30] ss:$8 sps:$4 sm:$0xff]   ;;  %v924_v31 = vld [vmem:[%s1157_s0 + $0xa0] ss:$8 sps:$4 sm:$0xff]   ;;  %v925_v32 = vld [vmem:[%s1157_s0 + $0x44] ss:$8 sps:$4 sm:$0xff]  }
   0xc   :  { %781 = vmatprep.subr.bf16.mxu0 %v891_v6  ;;  %872 = vmatprep.subr.bf16.mxu1 %v891_v6  ;;  %v928_v33 = vld [vmem:[%s1157_s0 + $0xb4] ss:$8 sps:$4 sm:$0xff]   ;;  %v927_v34 = vld [vmem:[%s1157_s0 + $0x40] ss:$8 sps:$4 sm:$0xff]   ;;  %v930_v35 = vld [vmem:[%s1157_s0 + $0xb0] ss:$8 sps:$4 sm:$0xff]  }
   0xd   :  { %v931_v36 = vld [vmem:[%s1157_s0 + $0x54] ss:$8 sps:$4 sm:$0xff]   ;;  %v934_v37 = vld [vmem:[%s1157_s0 + $0xc4] ss:$8 sps:$4 sm:$0xff]   ;;  %v933_v38 = vld [vmem:[%s1157_s0 + $0x50] ss:$8 sps:$4 sm:$0xff]  }
   0xe   :  { %v936_v39 = vld [vmem:[%s1157_s0 + $0xc0] ss:$8 sps:$4 sm:$0xff]   ;;  %v937_v40 = vld [vmem:[%s1157_s0 + $0x64] ss:$8 sps:$4 sm:$0xff]  }
   0xf   :  { %782 = vmatpush3.bf16.msra.mxu0 %v892_v7  ;;  %880 = vmatpush3.bf16.msra.mxu1 %v892_v7  ;;  %v939_v41 = vld [vmem:[%s1157_s0 + $0x60] ss:$8 sps:$4 sm:$0xff]  }
  0x10   :  { %783 = vmatprep.subr.bf16.mxu0 %v893_v8  ;;  %873 = vmatprep.subr.bf16.mxu1 %v893_v8  ;;  %v1089_v44 = vld [vmem:[%s1158_s2] ss:$0 sm:$0xff] }
  0x13   :  { %784 = vmatpush3.bf16.msra.mxu0 %v894_v9  ;;  %881 = vmatpush3.bf16.msra.mxu1 %v894_v9 }
  0x14   :  { %785 = vmatprep.subr.bf16.mxu0 %v895_v10  ;;  %874 = vmatprep.subr.bf16.mxu1 %v895_v10 }
  0x17   :  { %786 = vmatpush3.bf16.msra.mxu0 %v896_v13  ;;  %882 = vmatpush3.bf16.msra.mxu1 %v896_v13 }
  0x18   :  { %787 = vmatprep.subr.bf16.mxu0 %v897_v14  ;;  %875 = vmatprep.subr.bf16.mxu1 %v897_v14 }
  0x1b   :  { %788 = vmatpush3.bf16.msra.mxu0 %v898_v15  ;;  %883 = vmatpush3.bf16.msra.mxu1 %v898_v15 }
  0x1c   :  { %789 = vmatprep.subr.bf16.mxu0 %v899_v16  ;;  %876 = vmatprep.subr.bf16.mxu1 %v899_v16 }
  0x1f   :  { %790 = vmatpush3.bf16.msra.mxu0 %v900_v17  ;;  %884 = vmatpush3.bf16.msra.mxu1 %v900_v17 }
  0x22   :  { %339 = vmatmul.mubr.bf16.vlgmr.msra.gmra.mrb[0].mxu0 %v901_v18  ;;  %395 = vmatmul.mubr.bf16.vlgmr.msra.gmra.mrb[0].mxu1 %v904_v19 }
  0x23   :  { %346 = vmatprep.mubr.bf16.mxu0 %v907_v20  ;;  %402 = vmatprep.mubr.bf16.mxu1 %v910_v21 }
  0x2a   :  { %347 = vmatmul.mubr.bf16.gmra.mrb[4].mxu0 %v909_v22  ;;  %403 = vmatmul.mubr.bf16.gmra.mrb[4].mxu1 %v912_v23 }
  0x2b   :  { %354 = vmatprep.mubr.bf16.mxu0 %v913_v24  ;;  %410 = vmatprep.mubr.bf16.mxu1 %v916_v25 }
  0x32   :  { %355 = vmatmul.mubr.bf16.gmra.mrb[8].mxu0 %v915_v26  ;;  %411 = vmatmul.mubr.bf16.gmra.mrb[8].mxu1 %v918_v27 }
  0x33   :  { %362 = vmatprep.mubr.bf16.mxu0 %v919_v28  ;;  %418 = vmatprep.mubr.bf16.mxu1 %v922_v29 }
  0x3a   :  { %363 = vmatmul.mubr.bf16.gmra.mrb[12].mxu0 %v921_v30  ;;  %419 = vmatmul.mubr.bf16.gmra.mrb[12].mxu1 %v924_v31 }
  0x3b   :  { %370 = vmatprep.mubr.bf16.mxu0 %v925_v32  ;;  %426 = vmatprep.mubr.bf16.mxu1 %v928_v33 }
  0x42   :  { %371 = vmatmul.mubr.bf16.gmra.mrb[16].mxu0 %v927_v34  ;;  %427 = vmatmul.mubr.bf16.gmra.mrb[16].mxu1 %v930_v35 }
  0x43   :  { %378 = vmatprep.mubr.bf16.mxu0 %v931_v36  ;;  %434 = vmatprep.mubr.bf16.mxu1 %v934_v37 }
  0x4a   :  { %379 = vmatmul.mubr.bf16.gmra.mrb[20].mxu0 %v933_v38  ;;  %435 = vmatmul.mubr.bf16.gmra.mrb[20].mxu1 %v936_v39 }
  0x4b   :  { %386 = vmatprep.mubr.bf16.mxu0 %v937_v40 }
  0x52   :  { %387 = vmatmul.mubr.bf16.gmra.mrb[24].mxu0 %v939_v41 }
  0xf5   :  { %v791_v42 = vpop.f32.mrb[0].mxu0  ;;  %v833_v43 = vpop.f32.mrb[0].mxu1 }
  0xf6   :  { %v792_v45 = vpop.f32.mrb[1].mxu0  ;;  %v834_v46 = vpop.f32.mrb[1].mxu1 }
  0xf7   :  { %v793_v47 = vadd.f32 %v792_v45, %v791_v42  ;;  %v794_v48 = vpop.f32.mrb[2].mxu0  ;;  %v835_v49 = vadd.f32 %v834_v46, %v833_v43  ;;  %v836_v50 = vpop.f32.mrb[2].mxu1 }
  0xf8   :  { %v795_v51 = vpop.f32.mrb[3].mxu0  ;;  %v837_v52 = vpop.f32.mrb[3].mxu1 }
  0xf9   :  { %v341_v53 = vadd.f32 %v793_v47, %v1089_v44  ;;  %v796_v54 = vadd.f32 %v795_v51, %v794_v48  ;;  %v397_v55 = vadd.f32 %v835_v49, %v1089_v44  ;;  %v838_v56 = vadd.f32 %v837_v52, %v836_v50 }
  0xfb   :  { %v344_v57 = vadd.f32 %v796_v54, %v1089_v44  ;;  %v457_v58 = vmax.f32 %v397_v55, 0.0  ;;  %v400_v59 = vadd.f32 %v838_v56, %v1089_v44  ;;  %v443_v60 = vmax.f32 %v341_v53, 0.0 }
  0xfd   :  { %v444_v61 = vmax.f32 %v344_v57, 0.0  ;;  %v797_v62 = vpop.f32.mrb[4].mxu0  ;;  %v458_v63 = vmax.f32 %v400_v59, 0.0  ;;  %v839_v0 = vpop.f32.mrb[4].mxu1 }
  0xfe   :  { %v798_v1 = vpop.f32.mrb[5].mxu0  ;;  %v840_v2 = vpop.f32.mrb[5].mxu1 }
  0xff   :  { %v701_v3 = vpack.c.bf16 %v444_v61, %v443_v60  ;;  %v736_v4 = vpack.c.bf16 %v458_v63, %v457_v58  ;;  %v799_v5 = vadd.f32 %v798_v1, %v797_v62  ;;  %v800_v6 = vpop.f32.mrb[6].mxu0  ;;  %v841_v7 = vadd.f32 %v840_v2, %v839_v0  ;;  %v842_v8 = vpop.f32.mrb[6].mxu1 }
 0x100   :  { %v801_v9 = vpop.f32.mrb[7].mxu0  ;;  %v843_v10 = vpop.f32.mrb[7].mxu1 }
 0x101   :  { %702 = vst [vmem:[%s1159_s3] sm:$0xff] %v701_v3   ;;  %769 = vst [vmem:[%s1159_s3 + $0x38] sm:$0xff] %v736_v4   ;;  %v349_v11 = vadd.f32 %v799_v5, %v1089_v44  ;;  %v802_v12 = vadd.f32 %v801_v9, %v800_v6  ;;  %v405_v13 = vadd.f32 %v841_v7, %v1089_v44 }
 0x102   :  { %v844_v14 = vadd.f32 %v843_v10, %v842_v8 }
 0x103   :  { %v352_v15 = vadd.f32 %v802_v12, %v1089_v44  ;;  %v459_v16 = vmax.f32 %v405_v13, 0.0  ;;  %v445_v18 = vmax.f32 %v349_v11, 0.0 }
 0x104   :  { %v408_v17 = vadd.f32 %v844_v14, %v1089_v44 }
 0x105   :  { %v446_v19 = vmax.f32 %v352_v15, 0.0  ;;  %v803_v20 = vpop.f32.mrb[8].mxu0  ;;  %v845_v22 = vpop.f32.mrb[8].mxu1 }
 0x106   :  { %v460_v21 = vmax.f32 %v408_v17, 0.0  ;;  %v804_v23 = vpop.f32.mrb[9].mxu0  ;;  %v846_v24 = vpop.f32.mrb[9].mxu1 }
 0x107   :  { %v706_v25 = vpack.c.bf16 %v446_v19, %v445_v18  ;;  %v805_v27 = vadd.f32 %v804_v23, %v803_v20  ;;  %v806_v28 = vpop.f32.mrb[10].mxu0  ;;  %v847_v29 = vadd.f32 %v846_v24, %v845_v22  ;;  %v848_v30 = vpop.f32.mrb[10].mxu1 }
 0x108   :  { %v741_v26 = vpack.c.bf16 %v460_v21, %v459_v16  ;;  %v807_v31 = vpop.f32.mrb[11].mxu0  ;;  %v849_v32 = vpop.f32.mrb[11].mxu1 }
 0x109   :  { %763 = vst [vmem:[%s1159_s3 + $0x8] sm:$0xff] %v706_v25   ;;  %v357_v33 = vadd.f32 %v805_v27, %v1089_v44  ;;  %v808_v34 = vadd.f32 %v807_v31, %v806_v28  ;;  %v413_v35 = vadd.f32 %v847_v29, %v1089_v44  ;;  %v850_v36 = vadd.f32 %v849_v32, %v848_v30 }
 0x10a   :  { %770 = vst [vmem:[%s1159_s3 + $0x40] sm:$0xff] %v741_v26  }
 0x10b   :  { %v360_v37 = vadd.f32 %v808_v34, %v1089_v44  ;;  %v461_v38 = vmax.f32 %v413_v35, 0.0  ;;  %v416_v39 = vadd.f32 %v850_v36, %v1089_v44  ;;  %v447_v40 = vmax.f32 %v357_v33, 0.0 }
 0x10d   :  { %v448_v41 = vmax.f32 %v360_v37, 0.0  ;;  %v809_v42 = vpop.f32.mrb[12].mxu0  ;;  %v462_v43 = vmax.f32 %v416_v39, 0.0  ;;  %v851_v45 = vpop.f32.mrb[12].mxu1 }
 0x10e   :  { %v810_v46 = vpop.f32.mrb[13].mxu0  ;;  %v852_v47 = vpop.f32.mrb[13].mxu1 }
 0x10f   :  { %v711_v48 = vpack.c.bf16 %v448_v41, %v447_v40  ;;  %v746_v49 = vpack.c.bf16 %v462_v43, %v461_v38  ;;  %v811_v50 = vadd.f32 %v810_v46, %v809_v42  ;;  %v812_v51 = vpop.f32.mrb[14].mxu0  ;;  %v853_v52 = vadd.f32 %v852_v47, %v851_v45  ;;  %v854_v53 = vpop.f32.mrb[14].mxu1 }
 0x110   :  { %v813_v54 = vpop.f32.mrb[15].mxu0  ;;  %v855_v55 = vpop.f32.mrb[15].mxu1 }
 0x111   :  { %764 = vst [vmem:[%s1159_s3 + $0x10] sm:$0xff] %v711_v48   ;;  %771 = vst [vmem:[%s1159_s3 + $0x48] sm:$0xff] %v746_v49   ;;  %v365_v56 = vadd.f32 %v811_v50, %v1089_v44  ;;  %v814_v57 = vadd.f32 %v813_v54, %v812_v51  ;;  %v421_v58 = vadd.f32 %v853_v52, %v1089_v44 }
 0x112   :  { %v856_v59 = vadd.f32 %v855_v55, %v854_v53 }
 0x113   :  { %v368_v60 = vadd.f32 %v814_v57, %v1089_v44  ;;  %v463_v61 = vmax.f32 %v421_v58, 0.0  ;;  %v449_v63 = vmax.f32 %v365_v56, 0.0 }
 0x114   :  { %v424_v62 = vadd.f32 %v856_v59, %v1089_v44 }
 0x115   :  { %v450_v0 = vmax.f32 %v368_v60, 0.0  ;;  %v815_v1 = vpop.f32.mrb[16].mxu0  ;;  %v857_v3 = vpop.f32.mrb[16].mxu1 }
 0x116   :  { %v464_v2 = vmax.f32 %v424_v62, 0.0  ;;  %v816_v4 = vpop.f32.mrb[17].mxu0  ;;  %v858_v5 = vpop.f32.mrb[17].mxu1 }
 0x117   :  { %v716_v6 = vpack.c.bf16 %v450_v0, %v449_v63  ;;  %v817_v8 = vadd.f32 %v816_v4, %v815_v1  ;;  %v818_v9 = vpop.f32.mrb[18].mxu0  ;;  %v859_v10 = vadd.f32 %v858_v5, %v857_v3  ;;  %v860_v11 = vpop.f32.mrb[18].mxu1 }
 0x118   :  { %v751_v7 = vpack.c.bf16 %v464_v2, %v463_v61  ;;  %v819_v12 = vpop.f32.mrb[19].mxu0  ;;  %v861_v13 = vpop.f32.mrb[19].mxu1 }
 0x119   :  { %765 = vst [vmem:[%s1159_s3 + $0x18] sm:$0xff] %v716_v6   ;;  %v373_v14 = vadd.f32 %v817_v8, %v1089_v44  ;;  %v820_v15 = vadd.f32 %v819_v12, %v818_v9  ;;  %v429_v16 = vadd.f32 %v859_v10, %v1089_v44  ;;  %v862_v17 = vadd.f32 %v861_v13, %v860_v11 }
 0x11a   :  { %772 = vst [vmem:[%s1159_s3 + $0x50] sm:$0xff] %v751_v7  }
 0x11b   :  { %v376_v18 = vadd.f32 %v820_v15, %v1089_v44  ;;  %v465_v19 = vmax.f32 %v429_v16, 0.0  ;;  %v432_v20 = vadd.f32 %v862_v17, %v1089_v44  ;;  %v451_v21 = vmax.f32 %v373_v14, 0.0 }
 0x11d   :  { %v452_v22 = vmax.f32 %v376_v18, 0.0  ;;  %v821_v23 = vpop.f32.mrb[20].mxu0  ;;  %v466_v24 = vmax.f32 %v432_v20, 0.0  ;;  %v863_v25 = vpop.f32.mrb[20].mxu1 }
 0x11e   :  { %v822_v26 = vpop.f32.mrb[21].mxu0  ;;  %v864_v27 = vpop.f32.mrb[21].mxu1 }
 0x11f   :  { %v721_v28 = vpack.c.bf16 %v452_v22, %v451_v21  ;;  %v756_v29 = vpack.c.bf16 %v466_v24, %v465_v19  ;;  %v823_v30 = vadd.f32 %v822_v26, %v821_v23  ;;  %v824_v31 = vpop.f32.mrb[22].mxu0  ;;  %v865_v32 = vadd.f32 %v864_v27, %v863_v25  ;;  %v866_v33 = vpop.f32.mrb[22].mxu1 }
 0x120   :  { %v825_v34 = vpop.f32.mrb[23].mxu0  ;;  %v867_v35 = vpop.f32.mrb[23].mxu1 }
 0x121   :  { %766 = vst [vmem:[%s1159_s3 + $0x20] sm:$0xff] %v721_v28   ;;  %773 = vst [vmem:[%s1159_s3 + $0x58] sm:$0xff] %v756_v29   ;;  %v381_v36 = vadd.f32 %v823_v30, %v1089_v44  ;;  %v826_v37 = vadd.f32 %v825_v34, %v824_v31  ;;  %v437_v38 = vadd.f32 %v865_v32, %v1089_v44 }
 0x122   :  { %v868_v39 = vadd.f32 %v867_v35, %v866_v33 }
 0x123   :  { %v384_v40 = vadd.f32 %v826_v37, %v1089_v44  ;;  %v467_v41 = vmax.f32 %v437_v38, 0.0  ;;  %v453_v43 = vmax.f32 %v381_v36, 0.0 }
 0x124   :  { %v440_v42 = vadd.f32 %v868_v39, %v1089_v44 }
 0x125   :  { %v454_v45 = vmax.f32 %v384_v40, 0.0  ;;  %v827_v46 = vpop.f32.mrb[24].mxu0 }
 0x126   :  { %v468_v47 = vmax.f32 %v440_v42, 0.0  ;;  %v828_v48 = vpop.f32.mrb[25].mxu0 }
 0x127   :  { %v726_v49 = vpack.c.bf16 %v454_v45, %v453_v43  ;;  %v829_v51 = vadd.f32 %v828_v48, %v827_v46  ;;  %v830_v52 = vpop.f32.mrb[26].mxu0 }
 0x128   :  { %v761_v50 = vpack.c.bf16 %v468_v47, %v467_v41  ;;  %v831_v53 = vpop.f32.mrb[27].mxu0 }
 0x129   :  { %767 = vst [vmem:[%s1159_s3 + $0x28] sm:$0xff] %v726_v49   ;;  %v389_v54 = vadd.f32 %v829_v51, %v1089_v44  ;;  %v832_v55 = vadd.f32 %v831_v53, %v830_v52 }
 0x12a   :  { %774 = vst [vmem:[%s1159_s3 + $0x60] sm:$0xff] %v761_v50  }
 0x12b   :  { %v392_v56 = vadd.f32 %v832_v55, %v1089_v44  ;;  %v455_v57 = vmax.f32 %v389_v54, 0.0 }
 0x12d   :  { %v456_v58 = vmax.f32 %v392_v56, 0.0 }
 0x12f   :  { %v731_v59 = vpack.c.bf16 %v456_v58, %v455_v57 }
 0x131   :  { %768 = vst [vmem:[%s1159_s3 + $0x30] sm:$0xff] %v731_v59  }

// kernel: _lambda_.4
= control target key start
LH: loop header
LB: loop body
LE: loop exit
PB: predicated region body
PF: predicated region fallthrough
CT: control target
= control target key end

     0   :  { %s761_s1 = inlined_call_operand.vmem [shape: bf16[512,128], index: 1, kind: input, shape index: {}]   ;;  %s762_s0 = inlined_call_operand.vmem [shape: bf16[32,512], index: 0, kind: input, shape index: {}]   ;;  %s763_s2 = inlined_call_operand.vmem [shape: f32[1,128], index: 2, kind: input, shape index: {}]   ;;  %s764_s3 = inlined_call_operand.vmem [shape: bf16[32,128], index: 3, kind: output, shape index: {}]  }
   0x1   :  { %v568_v0 = vld [vmem:[%s761_s1 + $0x40] sm:$0xff]   ;;  %v572_v4 = vld [vmem:[%s761_s1 + $0x48] sm:$0xff]   ;;  %v576_v8 = vld [vmem:[%s761_s1 + $0x50] sm:$0xff]  }
   0x2   :  { %v569_v1 = vld [vmem:[%s761_s1 + $0xc0] sm:$0xff]   ;;  %512 = vmatprep.subr.bf16.mxu0 %v568_v0  ;;  %v573_v5 = vld [vmem:[%s761_s1 + $0xc8] sm:$0xff]   ;;  %v577_v9 = vld [vmem:[%s761_s1 + $0xd0] sm:$0xff]  }
   0x3   :  { %v570_v2 = vld [vmem:[%s761_s1] sm:$0xff]   ;;  %540 = vmatprep.subr.bf16.mxu1 %v569_v1  ;;  %v574_v6 = vld [vmem:[%s761_s1 + $0x8] sm:$0xff]   ;;  %v578_v10 = vld [vmem:[%s761_s1 + $0x10] sm:$0xff]  }
   0x4   :  { %v571_v3 = vld [vmem:[%s761_s1 + $0x80] sm:$0xff]   ;;  %513 = vmatpush3.bf16.msra.mxu0 %v570_v2  ;;  %v575_v7 = vld [vmem:[%s761_s1 + $0x88] sm:$0xff]   ;;  %v579_v11 = vld [vmem:[%s761_s1 + $0x90] sm:$0xff]  }
   0x5   :  { %541 = vmatpush3.bf16.msra.mxu1 %v571_v3  ;;  %514 = vmatprep.subr.bf16.mxu0 %v572_v4  ;;  %v580_v12 = vld [vmem:[%s761_s1 + $0x58] sm:$0xff]   ;;  %v584_v16 = vld [vmem:[%s761_s1 + $0x60] sm:$0xff]   ;;  %v588_v20 = vld [vmem:[%s761_s1 + $0x68] sm:$0xff]  }
   0x6   :  { %542 = vmatprep.subr.bf16.mxu1 %v573_v5  ;;  %v581_v13 = vld [vmem:[%s761_s1 + $0xd8] sm:$0xff]   ;;  %v585_v17 = vld [vmem:[%s761_s1 + $0xe0] sm:$0xff]   ;;  %v589_v21 = vld [vmem:[%s761_s1 + $0xe8] sm:$0xff]  }
   0x7   :  { %v582_v14 = vld [vmem:[%s761_s1 + $0x18] sm:$0xff]   ;;  %v586_v18 = vld [vmem:[%s761_s1 + $0x20] sm:$0xff]   ;;  %v590_v22 = vld [vmem:[%s761_s1 + $0x28] sm:$0xff]  }
   0x8   :  { %515 = vmatpush3.bf16.msra.mxu0 %v574_v6  ;;  %v583_v15 = vld [vmem:[%s761_s1 + $0x98] sm:$0xff]   ;;  %v587_v19 = vld [vmem:[%s761_s1 + $0xa0] sm:$0xff]   ;;  %v591_v23 = vld [vmem:[%s761_s1 + $0xa8] sm:$0xff]  }
   0x9   :  { %543 = vmatpush3.bf16.msra.mxu1 %v575_v7  ;;  %516 = vmatprep.subr.bf16.mxu0 %v576_v8  ;;  %v592_v24 = vld [vmem:[%s761_s1 + $0x70] sm:$0xff]   ;;  %v596_v28 = vld [vmem:[%s761_s1 + $0x78] sm:$0xff]   ;;  %v452_v42 = vld [vmem:[%s763_s2] ss:$0 sm:$0xff] }
   0xa   :  { %544 = vmatprep.subr.bf16.mxu1 %v577_v9  ;;  %v593_v25 = vld [vmem:[%s761_s1 + $0xf0] sm:$0xff]   ;;  %v597_v29 = vld [vmem:[%s761_s1 + $0xf8] sm:$0xff]  }
   0xb   :  { %v594_v26 = vld [vmem:[%s761_s1 + $0x30] sm:$0xff]   ;;  %v598_v30 = vld [vmem:[%s761_s1 + $0x38] sm:$0xff]  }
   0xc   :  { %517 = vmatpush3.bf16.msra.mxu0 %v578_v10  ;;  %v595_v27 = vld [vmem:[%s761_s1 + $0xb0] sm:$0xff]   ;;  %v599_v31 = vld [vmem:[%s761_s1 + $0xb8] sm:$0xff]  }
   0xd   :  { %545 = vmatpush3.bf16.msra.mxu1 %v579_v11  ;;  %518 = vmatprep.subr.bf16.mxu0 %v580_v12  ;;  %v600_v32 = vld [vmem:[%s762_s0] ss:$16 sps:$4 sm:$0xff]   ;;  %v602_v33 = vld [vmem:[%s762_s0 + $0x4] ss:$16 sps:$4 sm:$0xff]   ;;  %v603_v34 = vld [vmem:[%s762_s0 + $0x8] ss:$16 sps:$4 sm:$0xff]  }
   0xe   :  { %546 = vmatprep.subr.bf16.mxu1 %v581_v13  ;;  %v605_v35 = vld [vmem:[%s762_s0 + $0xc] ss:$16 sps:$4 sm:$0xff]   ;;  %358 = vmatprep.mubr.bf16.mxu0 %v602_v33  ;;  %v606_v36 = vld [vmem:[%s762_s0 + $0x24] ss:$16 sps:$4 sm:$0xff]   ;;  %v610_v38 = vld [vmem:[%s762_s0 + $0x20] ss:$16 sps:$4 sm:$0xff]  }
   0xf   :  { %407 = vmatprep.mubr.bf16.mxu1 %v605_v35  ;;  %v608_v37 = vld [vmem:[%s762_s0 + $0x2c] ss:$16 sps:$4 sm:$0xff]   ;;  %v611_v39 = vld [vmem:[%s762_s0 + $0x28] ss:$16 sps:$4 sm:$0xff]  }
  0x10   :  { %519 = vmatpush3.bf16.msra.mxu0 %v582_v14 }
  0x11   :  { %547 = vmatpush3.bf16.msra.mxu1 %v583_v15  ;;  %520 = vmatprep.subr.bf16.mxu0 %v584_v16 }
  0x12   :  { %548 = vmatprep.subr.bf16.mxu1 %v585_v17 }
  0x14   :  { %521 = vmatpush3.bf16.msra.mxu0 %v586_v18 }
  0x15   :  { %549 = vmatpush3.bf16.msra.mxu1 %v587_v19  ;;  %522 = vmatprep.subr.bf16.mxu0 %v588_v20 }
  0x16   :  { %550 = vmatprep.subr.bf16.mxu1 %v589_v21 }
  0x18   :  { %523 = vmatpush3.bf16.msra.mxu0 %v590_v22 }
  0x19   :  { %551 = vmatpush3.bf16.msra.mxu1 %v591_v23  ;;  %524 = vmatprep.subr.bf16.mxu0 %v592_v24 }
  0x1a   :  { %552 = vmatprep.subr.bf16.mxu1 %v593_v25 }
  0x1c   :  { %525 = vmatpush3.bf16.msra.mxu0 %v594_v26 }
  0x1d   :  { %553 = vmatpush3.bf16.msra.mxu1 %v595_v27  ;;  %526 = vmatprep.subr.bf16.mxu0 %v596_v28 }
  0x1e   :  { %554 = vmatprep.subr.bf16.mxu1 %v597_v29 }
  0x20   :  { %527 = vmatpush3.bf16.msra.mxu0 %v598_v30 }
  0x21   :  { %555 = vmatpush3.bf16.msra.mxu1 %v599_v31 }
  0x23   :  { %359 = vmatmul.mubr.bf16.vlgmr.msra.gmra.mrb[0].mxu0 %v600_v32 }
  0x24   :  { %408 = vmatmul.mubr.bf16.vlgmr.msra.gmra.mrb[0].mxu1 %v603_v34  ;;  %366 = vmatprep.mubr.bf16.mxu0 %v606_v36 }
  0x25   :  { %415 = vmatprep.mubr.bf16.mxu1 %v608_v37 }
  0x2b   :  { %367 = vmatmul.mubr.bf16.gmra.mrb[4].mxu0 %v610_v38 }
  0x2c   :  { %416 = vmatmul.mubr.bf16.gmra.mrb[4].mxu1 %v611_v39 }
  0xf6   :  { %v528_v40 = vpop.f32.mrb[0].mxu0 }
  0xf7   :  { %v556_v41 = vpop.f32.mrb[0].mxu1  ;;  %v529_v43 = vpop.f32.mrb[1].mxu0 }
  0xf8   :  { %v530_v44 = vadd.f32 %v529_v43, %v528_v40  ;;  %v557_v45 = vpop.f32.mrb[1].mxu1  ;;  %v531_v46 = vpop.f32.mrb[2].mxu0 }
  0xf9   :  { %v558_v47 = vadd.f32 %v557_v45, %v556_v41  ;;  %v559_v48 = vpop.f32.mrb[2].mxu1  ;;  %v532_v49 = vpop.f32.mrb[3].mxu0 }
  0xfa   :  { %v361_v50 = vadd.f32 %v530_v44, %v452_v42  ;;  %v533_v51 = vadd.f32 %v532_v49, %v531_v46  ;;  %v560_v52 = vpop.f32.mrb[3].mxu1 }
  0xfb   :  { %v561_v53 = vadd.f32 %v560_v52, %v559_v48 }
  0xfc   :  { %v410_v54 = vadd.f32 %v558_v47, %v361_v50  ;;  %v364_v55 = vadd.f32 %v533_v51, %v452_v42 }
  0xfe   :  { %v413_v56 = vadd.f32 %v561_v53, %v364_v55  ;;  %v534_v57 = vpop.f32.mrb[4].mxu0  ;;  %v424_v60 = vmax.f32 %v410_v54, 0.0 }
  0xff   :  { %v562_v58 = vpop.f32.mrb[4].mxu1  ;;  %v535_v59 = vpop.f32.mrb[5].mxu0 }
 0x100   :  { %v425_v61 = vmax.f32 %v413_v56, 0.0  ;;  %v536_v62 = vadd.f32 %v535_v59, %v534_v57  ;;  %v563_v63 = vpop.f32.mrb[5].mxu1  ;;  %v537_v0 = vpop.f32.mrb[6].mxu0 }
 0x101   :  { %v564_v1 = vadd.f32 %v563_v63, %v562_v58  ;;  %v565_v2 = vpop.f32.mrb[6].mxu1  ;;  %v538_v3 = vpop.f32.mrb[7].mxu0 }
 0x102   :  { %v504_v4 = vpack.c.bf16 %v425_v61, %v424_v60  ;;  %v369_v5 = vadd.f32 %v536_v62, %v452_v42  ;;  %v539_v6 = vadd.f32 %v538_v3, %v537_v0  ;;  %v566_v7 = vpop.f32.mrb[7].mxu1 }
 0x103   :  { %v567_v8 = vadd.f32 %v566_v7, %v565_v2 }
 0x104   :  { %505 = vst [vmem:[%s764_s3] sm:$0xff] %v504_v4   ;;  %v418_v9 = vadd.f32 %v564_v1, %v369_v5  ;;  %v372_v10 = vadd.f32 %v539_v6, %v452_v42 }
 0x106   :  { %v421_v11 = vadd.f32 %v567_v8, %v372_v10  ;;  %v426_v12 = vmax.f32 %v418_v9, 0.0 }
 0x108   :  { %v427_v13 = vmax.f32 %v421_v11, 0.0 }
 0x10a   :  { %v509_v14 = vpack.c.bf16 %v427_v13, %v426_v12 }
 0x10c   :  { %511 = vst [vmem:[%s764_s3 + $0x8] sm:$0xff] %v509_v14  }

// kernel: _lambda_.5
= control target key start
LH: loop header
LB: loop body
LE: loop exit
PB: predicated region body
PF: predicated region fallthrough
CT: control target
= control target key end

     0   :  { %v2866_v33 = vmov 0.0   ;;  %vm2867_vm0 = vmmov 0   ;;  %vm353_vm1 = vcmask 523264   ;;  %s3672_s1 = inlined_call_operand.vmem [shape: bf16[576,64], index: 1, kind: input, shape index: {}]   ;;  %s3673_s0 = inlined_call_operand.vmem [shape: bf16[4,16,576], index: 0, kind: input, shape index: {}]   ;;  %s3674_s3 = inlined_call_operand.vmem [shape: bf16[4,64,512], index: 3, kind: input, shape index: {}]   ;;  %s3675_s2 = inlined_call_operand.vmem [shape: f32[1,64], index: 2, kind: input, shape index: {}]   ;;  %s3676_s5 = inlined_call_operand.vmem [shape: bf16[512,128], index: 5, kind: input, shape index: {}]   ;;  %s3677_s4 = inlined_call_operand.vmem [shape: f32[1,512], index: 4, kind: input, shape index: {}]   ;;  %s3678_s6 = inlined_call_operand.vmem [shape: f32[1,128], index: 6, kind: input, shape index: {}]   ;;  %s3679_s7 = inlined_call_operand.vmem [shape: f32[16,128], index: 7, kind: output, shape index: {}]  }
   0x1   :  { %v2912_v0 = vld [vmem:[%s3672_s1 + $0x40] sm:$0xff]   ;;  %v2935_v4 = vld [vmem:[%s3672_s1 + $0x48] sm:$0xff]   ;;  %v2959_v8 = vld [vmem:[%s3672_s1 + $0x50] sm:$0xff]  }
   0x2   :  { %v2917_v1 = vld [vmem:[%s3672_s1] sm:$0xff]   ;;  %2350 = vmatprep.subr.bf16.mxu0 %v2912_v0  ;;  %v2941_v5 = vld [vmem:[%s3672_s1 + $0x8] sm:$0xff]   ;;  %v2965_v9 = vld [vmem:[%s3672_s1 + $0x10] sm:$0xff]  }
   0x3   :  { %v2923_v2 = vld [vmem:[%s3672_s1 + $0xc0] sm:$0xff]   ;;  %2351 = vmatpush3.bf16.msra.mxu0 %v2917_v1  ;;  %v2947_v6 = vld [vmem:[%s3672_s1 + $0xc8] sm:$0xff]   ;;  %v2971_v10 = vld [vmem:[%s3672_s1 + $0xd0] sm:$0xff]  }
   0x4   :  { %v2929_v3 = vld [vmem:[%s3672_s1 + $0x80] sm:$0xff]   ;;  %2372 = vmatprep.subr.bf16.mxu1 %v2923_v2  ;;  %2352 = vmatprep.subr.bf16.mxu0 %v2935_v4  ;;  %v2953_v7 = vld [vmem:[%s3672_s1 + $0x88] sm:$0xff]   ;;  %v2977_v11 = vld [vmem:[%s3672_s1 + $0x90] sm:$0xff]  }
   0x5   :  { %2373 = vmatpush3.bf16.msra.mxu1 %v2929_v3  ;;  %v2983_v12 = vld [vmem:[%s3672_s1 + $0x58] sm:$0xff]   ;;  %v3007_v16 = vld [vmem:[%s3672_s1 + $0x60] sm:$0xff]   ;;  %v3031_v20 = vld [vmem:[%s3672_s1 + $0x68] sm:$0xff]  }
   0x6   :  { %2374 = vmatprep.subr.bf16.mxu1 %v2947_v6  ;;  %v2989_v13 = vld [vmem:[%s3672_s1 + $0x18] sm:$0xff]   ;;  %v3013_v17 = vld [vmem:[%s3672_s1 + $0x20] sm:$0xff]   ;;  %v3037_v21 = vld [vmem:[%s3672_s1 + $0x28] sm:$0xff]  }
   0x7   :  { %2353 = vmatpush3.bf16.msra.mxu0 %v2941_v5  ;;  %v2995_v14 = vld [vmem:[%s3672_s1 + $0xd8] sm:$0xff]   ;;  %v3019_v18 = vld [vmem:[%s3672_s1 + $0xe0] sm:$0xff]   ;;  %v3043_v22 = vld [vmem:[%s3672_s1 + $0xe8] sm:$0xff]  }
   0x8   :  { %2354 = vmatprep.subr.bf16.mxu0 %v2959_v8  ;;  %v3001_v15 = vld [vmem:[%s3672_s1 + $0x98] sm:$0xff]   ;;  %v3025_v19 = vld [vmem:[%s3672_s1 + $0xa0] sm:$0xff]   ;;  %v3049_v23 = vld [vmem:[%s3672_s1 + $0xa8] sm:$0xff]  }
   0x9   :  { %2375 = vmatpush3.bf16.msra.mxu1 %v2953_v7  ;;  %v3055_v24 = vld [vmem:[%s3672_s1 + $0x70] sm:$0xff]   ;;  %v3079_v28 = vld [vmem:[%s3672_s1 + $0x78] sm:$0xff]   ;;  %v2702_v36 = vld [vmem:[%s3673_s0 + $0xc] ss:$20 sps:$4 sm:$0xff]  }
   0xa   :  { %2376 = vmatprep.subr.bf16.mxu1 %v2971_v10  ;;  %v3061_v25 = vld [vmem:[%s3672_s1 + $0x30] sm:$0xff]   ;;  %v3085_v29 = vld [vmem:[%s3672_s1 + $0x38] sm:$0xff]   ;;  %v3117_v37 = vld [vmem:[%s3672_s1 + $0x100] sm:$0xff]   ;;  %430 = vmatprep.mubr.bf16.mxu1 %v2702_v36 }
   0xb   :  { %2355 = vmatpush3.bf16.msra.mxu0 %v2965_v9  ;;  %v3067_v26 = vld [vmem:[%s3672_s1 + $0xf0] sm:$0xff]   ;;  %v3091_v30 = vld [vmem:[%s3672_s1 + $0xf8] sm:$0xff]   ;;  %v3124_v38 = vld [vmem:[%s3672_s1 + $0x108] sm:$0xff]  }
   0xc   :  { %2356 = vmatprep.subr.bf16.mxu0 %v2983_v12  ;;  %v3073_v27 = vld [vmem:[%s3672_s1 + $0xb0] sm:$0xff]   ;;  %v2698_v32 = vld [vmem:[%s3673_s0 + $0x4] ss:$20 sps:$4 sm:$0xff]   ;;  %v2700_v35 = vld [vmem:[%s3673_s0 + $0x8] ss:$20 sps:$4 sm:$0xff]  }
   0xd   :  { %2377 = vmatpush3.bf16.msra.mxu1 %v2977_v11  ;;  %v2696_v31 = vld [vmem:[%s3673_s0] ss:$20 sps:$4 sm:$0xff]   ;;  %v3105_v34 = vld [vmem:[%s3672_s1 + $0xb8] sm:$0xff]   ;;  %389 = vmatprep.mubr.bf16.mxu0 %v2698_v32  ;;  %v2707_v42 = vld [vmem:[%s3673_s0 + $0x10] ss:$20 sps:$4 sm:$0xff]   ;;  %v2868_v32 = vmov 0  }
   0xe   :  { %2378 = vmatprep.subr.bf16.mxu1 %v2995_v14  ;;  %v2710_v39 = vld [vmem:[%s3673_s0 + $0x2c] ss:$20 sps:$4 sm:$0xff]   ;;  %v3138_v40 = vld [vmem:[%s3672_s1 + $0x110] sm:$0xff]   ;;  %v3145_v41 = vld [vmem:[%s3672_s1 + $0x118] sm:$0xff]  }
   0xf   :  { %2357 = vmatpush3.bf16.msra.mxu0 %v2989_v13  ;;  %v2713_v43 = vld [vmem:[%s3673_s0 + $0x34] ss:$20 sps:$4 sm:$0xff]   ;;  %v2711_v45 = vld [vmem:[%s3673_s0 + $0x30] ss:$20 sps:$4 sm:$0xff]   ;;  %v2714_v46 = vld [vmem:[%s3673_s0 + $0x38] ss:$20 sps:$4 sm:$0xff]  }
  0x10   :  { %2358 = vmatprep.subr.bf16.mxu0 %v3007_v16  ;;  %v2708_v44 = vld [vmem:[%s3673_s0 + $0x28] ss:$20 sps:$4 sm:$0xff]   ;;  %v2715_v47 = vld [vmem:[%s3674_s3 + $0x80] ss:$16 sps:$4 sm:$0xff]   ;;  %v2717_v48 = vld [vmem:[%s3674_s3 + $0x84] ss:$16 sps:$4 sm:$0xff]  }
  0x11   :  { %2379 = vmatpush3.bf16.msra.mxu1 %v3001_v15  ;;  %v2718_v49 = vld [vmem:[%s3674_s3 + $0x88] ss:$16 sps:$4 sm:$0xff]   ;;  %v2720_v50 = vld [vmem:[%s3674_s3 + $0x8c] ss:$16 sps:$4 sm:$0xff]   ;;  %v2723_v51 = vld [vmem:[%s3674_s3 + $0xa4] ss:$16 sps:$4 sm:$0xff]  }
  0x12   :  { %2380 = vmatprep.subr.bf16.mxu1 %v3019_v18  ;;  %v2726_v52 = vld [vmem:[%s3674_s3 + $0xac] ss:$16 sps:$4 sm:$0xff]   ;;  %v2721_v53 = vld [vmem:[%s3674_s3 + $0xa0] ss:$16 sps:$4 sm:$0xff]   ;;  %v2724_v54 = vld [vmem:[%s3674_s3 + $0xa8] ss:$16 sps:$4 sm:$0xff]  }
  0x13   :  { %2359 = vmatpush3.bf16.msra.mxu0 %v3013_v17  ;;  %v2729_v55 = vld [vmem:[%s3674_s3 + $0xc4] ss:$16 sps:$4 sm:$0xff]   ;;  %v2732_v56 = vld [vmem:[%s3674_s3 + $0xcc] ss:$16 sps:$4 sm:$0xff]   ;;  %v2727_v57 = vld [vmem:[%s3674_s3 + $0xc0] ss:$16 sps:$4 sm:$0xff]  }
  0x14   :  { %2360 = vmatprep.subr.bf16.mxu0 %v3031_v20  ;;  %v2730_v58 = vld [vmem:[%s3674_s3 + $0xc8] ss:$16 sps:$4 sm:$0xff]   ;;  %v2735_v59 = vld [vmem:[%s3674_s3 + $0xe4] ss:$16 sps:$4 sm:$0xff]   ;;  %v2738_v60 = vld [vmem:[%s3674_s3 + $0xec] ss:$16 sps:$4 sm:$0xff]  }
  0x15   :  { %2381 = vmatpush3.bf16.msra.mxu1 %v3025_v19  ;;  %v2733_v61 = vld [vmem:[%s3674_s3 + $0xe0] ss:$16 sps:$4 sm:$0xff]   ;;  %v2736_v62 = vld [vmem:[%s3674_s3 + $0xe8] ss:$16 sps:$4 sm:$0xff]   ;;  %v2741_v63 = vld [vmem:[%s3674_s3 + $0x4] ss:$16 sps:$4 sm:$0xff]  }
  0x16   :  { %2382 = vmatprep.subr.bf16.mxu1 %v3043_v22  ;;  %v3264_v36 = vld [vmem:[%s3675_s2] ss:$0 sm:$0xff] }
  0x17   :  { %2361 = vmatpush3.bf16.msra.mxu0 %v3037_v21 }
  0x18   :  { %2362 = vmatprep.subr.bf16.mxu0 %v3055_v24 }
  0x19   :  { %2383 = vmatpush3.bf16.msra.mxu1 %v3049_v23 }
  0x1a   :  { %2384 = vmatprep.subr.bf16.mxu1 %v3067_v26 }
  0x1b   :  { %2363 = vmatpush3.bf16.msra.mxu0 %v3061_v25 }
  0x1c   :  { %2364 = vmatprep.subr.bf16.mxu0 %v3079_v28 }
  0x1d   :  { %2385 = vmatpush3.bf16.msra.mxu1 %v3073_v27 }
  0x1e   :  { %2386 = vmatprep.subr.bf16.mxu1 %v3091_v30 }
  0x1f   :  { %2365 = vmatpush3.bf16.msra.mxu0 %v3085_v29 }
  0x20   :  { %2590 = vmatprep.subr.bf16.mxu0 %v2866_v33 }
  0x21   :  { %2387 = vmatpush3.bf16.msra.mxu1 %v3105_v34 }
  0x22   :  { %390 = vmatmul.mubr.bf16.vlgmr.msra.gmra.mrb[0].mxu0 %v2696_v31  ;;  %2399 = vmatprep.subr.bf16.mxu1 %v2912_v0  ;;  %v2744_v31 = vld [vmem:[%s3674_s3 + $0xc] ss:$16 sps:$4 sm:$0xff]  }
  0x23   :  { %2591 = vmatpush3.bf16.msra.mxu0 %v3117_v37  ;;  %2598 = vmatprep.mubr.msk.bf16.mxu0 %vm2867_vm0, %v2866_v33 }
  0x24   :  { %431 = vmatmul.mubr.bf16.vlgmr.msra.gmra.mrb[0].mxu1 %v2700_v35  ;;  %2592 = vmatprep.subr.bf16.mxu0 %v2866_v33 }
  0x25   :  { %2400 = vmatpush3.bf16.msra.mxu1 %v2917_v1  ;;  %566 = vmatprep.mubr.bf16.mxu1 %v2710_v39 }
  0x26   :  { %2401 = vmatprep.subr.bf16.mxu1 %v2935_v4 }
  0x27   :  { %2593 = vmatpush3.bf16.msra.mxu0 %v3124_v38 }
  0x28   :  { %2594 = vmatprep.subr.bf16.mxu0 %v2866_v33 }
  0x29   :  { %2402 = vmatpush3.bf16.msra.mxu1 %v2941_v5 }
  0x2a   :  { %2403 = vmatprep.subr.bf16.mxu1 %v2959_v8 }
  0x2b   :  { %2595 = vmatpush3.bf16.msra.mxu0 %v3138_v40 }
  0x2c   :  { %2596 = vmatprep.subr.bf16.mxu0 %v2866_v33 }
  0x2d   :  { %2404 = vmatpush3.bf16.msra.mxu1 %v2965_v9 }
  0x2e   :  { %2405 = vmatprep.subr.bf16.mxu1 %v2983_v12 }
  0x2f   :  { %2597 = vmatpush3.bf16.msra.mxu0 %v3145_v41 }
  0x30   :  { %2421 = vmatprep.subr.bf16.mxu0 %v2923_v2 }
  0x31   :  { %2406 = vmatpush3.bf16.msra.mxu1 %v2989_v13 }
  0x32   :  { %2599 = vmatmul.mubr.msk.bf16.vlgmr.msra.gmra.mrb[4].mxu0 %vm353_vm1, %v2707_v42  ;;  %2407 = vmatprep.subr.bf16.mxu1 %v3007_v16 }
  0x33   :  { %2422 = vmatpush3.bf16.msra.mxu0 %v2929_v3  ;;  %607 = vmatprep.mubr.bf16.mxu0 %v2713_v43 }
  0x34   :  { %2423 = vmatprep.subr.bf16.mxu0 %v2947_v6 }
  0x35   :  { %2408 = vmatpush3.bf16.msra.mxu1 %v3013_v17 }
  0x36   :  { %2409 = vmatprep.subr.bf16.mxu1 %v3031_v20 }
  0x37   :  { %2424 = vmatpush3.bf16.msra.mxu0 %v2953_v7 }
  0x38   :  { %2425 = vmatprep.subr.bf16.mxu0 %v2971_v10 }
  0x39   :  { %2410 = vmatpush3.bf16.msra.mxu1 %v3037_v21 }
  0x3a   :  { %2411 = vmatprep.subr.bf16.mxu1 %v3055_v24 }
  0x3b   :  { %2426 = vmatpush3.bf16.msra.mxu0 %v2977_v11 }
  0x3c   :  { %2427 = vmatprep.subr.bf16.mxu0 %v2995_v14 }
  0x3d   :  { %2412 = vmatpush3.bf16.msra.mxu1 %v3061_v25 }
  0x3e   :  { %2413 = vmatprep.subr.bf16.mxu1 %v3079_v28 }
  0x3f   :  { %2428 = vmatpush3.bf16.msra.mxu0 %v3001_v15 }
  0x40   :  { %2429 = vmatprep.subr.bf16.mxu0 %v3019_v18 }
  0x41   :  { %2414 = vmatpush3.bf16.msra.mxu1 %v3085_v29 }
  0x42   :  { %2602 = vmatprep.subr.bf16.mxu1 %v2866_v33 }
  0x43   :  { %2430 = vmatpush3.bf16.msra.mxu0 %v3025_v19 }
  0x44   :  { %567 = vmatmul.mubr.bf16.vlgmr.msra.gmra.mrb[4].mxu1 %v2708_v44  ;;  %2431 = vmatprep.subr.bf16.mxu0 %v3043_v22 }
  0x45   :  { %2603 = vmatpush3.bf16.msra.mxu1 %v3117_v37  ;;  %2610 = vmatprep.mubr.msk.bf16.mxu1 %vm2867_vm0, %v2866_v33 }
  0x46   :  { %2604 = vmatprep.subr.bf16.mxu1 %v2866_v33 }
  0x47   :  { %2432 = vmatpush3.bf16.msra.mxu0 %v3049_v23 }
  0x48   :  { %2433 = vmatprep.subr.bf16.mxu0 %v3067_v26 }
  0x49   :  { %2605 = vmatpush3.bf16.msra.mxu1 %v3124_v38 }
  0x4a   :  { %2606 = vmatprep.subr.bf16.mxu1 %v2866_v33 }
  0x4b   :  { %2434 = vmatpush3.bf16.msra.mxu0 %v3073_v27 }
  0x4c   :  { %2435 = vmatprep.subr.bf16.mxu0 %v3091_v30 }
  0x4d   :  { %2607 = vmatpush3.bf16.msra.mxu1 %v3138_v40 }
  0x4e   :  { %2608 = vmatprep.subr.bf16.mxu1 %v2866_v33 }
  0x4f   :  { %2436 = vmatpush3.bf16.msra.mxu0 %v3105_v34 }
  0x50   :  { %760 = vmatprep.subr.bf16.mxu0 %v2717_v48 }
  0x51   :  { %2609 = vmatpush3.bf16.msra.mxu1 %v3145_v41 }
  0x52   :  { %608 = vmatmul.mubr.bf16.vlgmr.msra.gmra.mrb[8].mxu0 %v2711_v45  ;;  %803 = vmatprep.subr.bf16.mxu1 %v2720_v50 }
  0x53   :  { %761 = vmatpush1.bf16.msra.mxu0 %v2715_v47  ;;  %792 = vmatprep.mubr.bf16.mxu0 %v2868_v32 }
  0x54   :  { %2611 = vmatmul.mubr.msk.bf16.vlgmr.msra.gmra.mrb[8].mxu1 %vm353_vm1, %v2714_v46  ;;  %762 = vmatprep.subr.bf16.mxu0 %v2723_v51 }
  0x55   :  { %804 = vmatpush1.bf16.msra.mxu1 %v2718_v49  ;;  %835 = vmatprep.mubr.bf16.mxu1 %v2868_v32 }
  0x56   :  { %805 = vmatprep.subr.bf16.mxu1 %v2726_v52 }
  0x57   :  { %763 = vmatpush1.bf16.msra.mxu0 %v2721_v53 }
  0x58   :  { %764 = vmatprep.subr.bf16.mxu0 %v2729_v55 }
  0x59   :  { %806 = vmatpush1.bf16.msra.mxu1 %v2724_v54 }
  0x5a   :  { %807 = vmatprep.subr.bf16.mxu1 %v2732_v56 }
  0x5b   :  { %765 = vmatpush1.bf16.msra.mxu0 %v2727_v57 }
  0x5c   :  { %766 = vmatprep.subr.bf16.mxu0 %v2735_v59 }
  0x5d   :  { %808 = vmatpush1.bf16.msra.mxu1 %v2730_v58 }
  0x5e   :  { %809 = vmatprep.subr.bf16.mxu1 %v2738_v60 }
  0x5f   :  { %767 = vmatpush1.bf16.msra.mxu0 %v2733_v61 }
  0x60   :  { %929 = vmatprep.subr.bf16.mxu0 %v2741_v63 }
  0x61   :  { %810 = vmatpush1.bf16.msra.mxu1 %v2736_v62 }
  0x62   :  { %972 = vmatprep.subr.bf16.mxu1 %v2744_v31 }
  0xf5   :  { %v2366_v35 = vpop.f32.mrb[0].mxu0 }
  0xf6   :  { %v2367_v39 = vpop.f32.mrb[1].mxu0 }
  0xf7   :  { %v2368_v42 = vadd.f32 %v2367_v39, %v2366_v35  ;;  %v2369_v43 = vpop.f32.mrb[2].mxu0  ;;  %v2388_v44 = vpop.f32.mrb[0].mxu1 }
  0xf8   :  { %v2370_v45 = vpop.f32.mrb[3].mxu0  ;;  %v2389_v48 = vpop.f32.mrb[1].mxu1 }
  0xf9   :  { %v392_v46 = vadd.f32 %v2368_v42, %v3264_v36  ;;  %v2371_v47 = vadd.f32 %v2370_v45, %v2369_v43  ;;  %v2390_v49 = vadd.f32 %v2389_v48, %v2388_v44  ;;  %v2391_v50 = vpop.f32.mrb[2].mxu1 }
  0xfa   :  { %v2392_v52 = vpop.f32.mrb[3].mxu1 }
  0xfb   :  { %v395_v51 = vadd.f32 %v2371_v47, %v3264_v36  ;;  %v2393_v53 = vadd.f32 %v2392_v52, %v2391_v50  ;;  %v433_v54 = vadd.f32 %v2390_v49, %v392_v46 }
  0xfd   :  { %v436_v55 = vadd.f32 %v2393_v53, %v395_v51 }
 0x105   :  { %v473_v56 = vpop.f32.mrb[4].mxu0 }
 0x106   :  { %v474_v57 = vadd.f32 %v473_v56, %v433_v54  ;;  %v2600_v58 = vpop.f32.mrb[5].mxu0 }
 0x107   :  { %v476_v59 = vpop.f32.mrb[6].mxu0 }
 0x108   :  { %v477_v60 = vadd.f32 %v476_v59, %v436_v55  ;;  %v2601_v61 = vpop.f32.mrb[7].mxu0  ;;  %v480_v62 = vmax.f32 %v474_v57, 0.0 }
 0x10a   :  { %v481_v63 = vmax.f32 %v477_v60, 0.0 }
 0x10c   :  { %v3268_v31 = vpack.c.bf16 %v481_v63, %v480_v62 }
 0x117   :  { %v2415_v35 = vpop.f32.mrb[4].mxu1 }
 0x118   :  { %v2416_v39 = vpop.f32.mrb[5].mxu1 }
 0x119   :  { %v2417_v42 = vadd.f32 %v2416_v39, %v2415_v35  ;;  %v2418_v43 = vpop.f32.mrb[6].mxu1  ;;  %v2739_v35 = vld [vmem:[%s3674_s3] ss:$16 sps:$4 sm:$0xff]   ;;  %v2742_v39 = vld [vmem:[%s3674_s3 + $0x8] ss:$16 sps:$4 sm:$0xff]  }
 0x11a   :  { %v2419_v44 = vpop.f32.mrb[7].mxu1 }
 0x11b   :  { %v2420_v45 = vadd.f32 %v2419_v44, %v2418_v43  ;;  %v569_v46 = vadd.f32 %v2417_v42, %v3264_v36  ;;  %v2747_v43 = vld [vmem:[%s3674_s3 + $0x24] ss:$16 sps:$4 sm:$0xff]   ;;  %v2750_v44 = vld [vmem:[%s3674_s3 + $0x2c] ss:$16 sps:$4 sm:$0xff]  }
 0x11d   :  { %v572_v54 = vadd.f32 %v2420_v45, %v3264_v36  ;;  %v2745_v45 = vld [vmem:[%s3674_s3 + $0x20] ss:$16 sps:$4 sm:$0xff]  }
 0x125   :  { %v2437_v47 = vpop.f32.mrb[8].mxu0 }
 0x126   :  { %v2438_v48 = vpop.f32.mrb[9].mxu0 }
 0x127   :  { %v2439_v49 = vadd.f32 %v2438_v48, %v2437_v47  ;;  %v2440_v50 = vpop.f32.mrb[10].mxu0  ;;  %v650_v51 = vpop.f32.mrb[8].mxu1  ;;  %v2748_v47 = vld [vmem:[%s3674_s3 + $0x28] ss:$16 sps:$4 sm:$0xff]   ;;  %v2753_v48 = vld [vmem:[%s3674_s3 + $0x44] ss:$16 sps:$4 sm:$0xff]  }
 0x128   :  { %v2441_v52 = vpop.f32.mrb[11].mxu0  ;;  %v2612_v53 = vpop.f32.mrb[9].mxu1 }
 0x129   :  { %v610_v55 = vadd.f32 %v2439_v49, %v569_v46  ;;  %v2442_v56 = vadd.f32 %v2441_v52, %v2440_v50  ;;  %v653_v57 = vpop.f32.mrb[10].mxu1  ;;  %v2756_v46 = vld [vmem:[%s3674_s3 + $0x4c] ss:$16 sps:$4 sm:$0xff]   ;;  %v2751_v49 = vld [vmem:[%s3674_s3 + $0x40] ss:$16 sps:$4 sm:$0xff]  }
 0x12a   :  { %v2613_v58 = vpop.f32.mrb[11].mxu1  ;;  %v2754_v50 = vld [vmem:[%s3674_s3 + $0x48] ss:$16 sps:$4 sm:$0xff]   ;;  %v2762_v52 = vld [vmem:[%s3674_s3 + $0x6c] ss:$16 sps:$4 sm:$0xff]  }
 0x12b   :  { %v651_v59 = vadd.f32 %v650_v51, %v610_v55  ;;  %v613_v60 = vadd.f32 %v2442_v56, %v572_v54  ;;  %v2759_v51 = vld [vmem:[%s3674_s3 + $0x64] ss:$16 sps:$4 sm:$0xff]   ;;  %v2757_v53 = vld [vmem:[%s3674_s3 + $0x60] ss:$16 sps:$4 sm:$0xff]   ;;  %v2760_v54 = vld [vmem:[%s3674_s3 + $0x68] ss:$16 sps:$4 sm:$0xff]  }
 0x12c   :  { %v2765_v55 = vld [vmem:[%s3673_s0 + $0x54] ss:$20 sps:$4 sm:$0xff]   ;;  %v2768_v56 = vld [vmem:[%s3673_s0 + $0x5c] ss:$20 sps:$4 sm:$0xff]  }
 0x12d   :  { %v654_v61 = vadd.f32 %v653_v57, %v613_v60  ;;  %v657_v62 = vmax.f32 %v651_v59, 0.0  ;;  %v2779_v57 = vld [vmem:[%s3674_s3 + $0x120] ss:$16 sps:$4 sm:$0xff]   ;;  %v2784_v58 = vld [vmem:[%s3674_s3 + $0x14c] ss:$16 sps:$4 sm:$0xff]  }
 0x12e   :  { %v2782_v59 = vld [vmem:[%s3674_s3 + $0x148] ss:$16 sps:$4 sm:$0xff]   ;;  %v2787_v60 = vld [vmem:[%s3674_s3 + $0x144] ss:$16 sps:$4 sm:$0xff]  }
 0x12f   :  { %v658_v63 = vmax.f32 %v654_v61, 0.0  ;;  %v2785_v61 = vld [vmem:[%s3674_s3 + $0x140] ss:$16 sps:$4 sm:$0xff]  }
 0x131   :  { %v659_v42 = vpack.c.bf16 %v658_v63, %v657_v62  ;;  %v2790_v62 = vld [vmem:[%s3674_s3 + $0x16c] ss:$16 sps:$4 sm:$0xff]   ;;  %v2788_v63 = vld [vmem:[%s3674_s3 + $0x168] ss:$16 sps:$4 sm:$0xff]  }
 0x133   :  { %2205 = vmatmul.mubr.msk.bf16.vlgmr.msra.gmra.mrb[12].mxu0 %vm353_vm1, %v659_v42  ;;  %2206 = vmatmul.mubr.msk.bf16.vlgmr.msra.gmra.mrb[12].mxu1 %vm353_vm1, %v659_v42 }
 0x134   :  { %930 = vmatpush1.bf16.msra.mxu0 %v2739_v35  ;;  %973 = vmatpush1.bf16.msra.mxu1 %v2742_v39  ;;  %v2793_v35 = vld [vmem:[%s3674_s3 + $0x164] ss:$16 sps:$4 sm:$0xff]   ;;  %v2791_v39 = vld [vmem:[%s3674_s3 + $0x160] ss:$16 sps:$4 sm:$0xff]  }
 0x135   :  { %931 = vmatprep.subr.bf16.mxu0 %v2747_v43  ;;  %974 = vmatprep.subr.bf16.mxu1 %v2750_v44 }
 0x136   :  { %961 = vmatprep.mubr.bf16.mxu0 %v2868_v32  ;;  %1004 = vmatprep.mubr.bf16.mxu1 %v2868_v32 }
 0x138   :  { %932 = vmatpush1.bf16.msra.mxu0 %v2745_v45  ;;  %975 = vmatpush1.bf16.msra.mxu1 %v2748_v47 }
 0x139   :  { %933 = vmatprep.subr.bf16.mxu0 %v2753_v48  ;;  %976 = vmatprep.subr.bf16.mxu1 %v2756_v46 }
 0x13c   :  { %934 = vmatpush1.bf16.msra.mxu0 %v2751_v49  ;;  %977 = vmatpush1.bf16.msra.mxu1 %v2754_v50 }
 0x13d   :  { %935 = vmatprep.subr.bf16.mxu0 %v2759_v51  ;;  %978 = vmatprep.subr.bf16.mxu1 %v2762_v52 }
 0x140   :  { %936 = vmatpush1.bf16.msra.mxu0 %v2757_v53  ;;  %979 = vmatpush1.bf16.msra.mxu1 %v2760_v54 }
 0x141   :  { %2448 = vmatprep.subr.bf16.mxu0 %v2912_v0  ;;  %2470 = vmatprep.subr.bf16.mxu1 %v2923_v2 }
 0x143   :  { %2223 = vmatmul.mubr.msk.bf16.vlgmr.msra.gmra.mrb[12].mxu0 %vm353_vm1, %v3268_v31  ;;  %2224 = vmatmul.mubr.msk.bf16.vlgmr.msra.gmra.mrb[12].mxu1 %vm353_vm1, %v3268_v31  ;;  %v2776_v31 = vld [vmem:[%s3674_s3 + $0x128] ss:$16 sps:$4 sm:$0xff]  }
 0x144   :  { %2449 = vmatpush3.bf16.msra.mxu0 %v2917_v1  ;;  %2471 = vmatpush3.bf16.msra.mxu1 %v2929_v3  ;;  %v2763_v1 = vld [vmem:[%s3673_s0 + $0x50] ss:$20 sps:$4 sm:$0xff]   ;;  %v2766_v3 = vld [vmem:[%s3673_s0 + $0x58] ss:$20 sps:$4 sm:$0xff]  }
 0x145   :  { %2450 = vmatprep.subr.bf16.mxu0 %v2935_v4  ;;  %2472 = vmatprep.subr.bf16.mxu1 %v2947_v6  ;;  %v2769_v4 = vld [vmem:[%s3673_s0 + $0x60] ss:$20 sps:$4 sm:$0xff]   ;;  %v2772_v6 = vld [vmem:[%s3674_s3 + $0x10c] ss:$16 sps:$4 sm:$0xff]  }
 0x146   :  { %1082 = vmatprep.mubr.bf16.mxu0 %v2765_v55  ;;  %1123 = vmatprep.mubr.bf16.mxu1 %v2768_v56 }
 0x148   :  { %2451 = vmatpush3.bf16.msra.mxu0 %v2941_v5  ;;  %2473 = vmatpush3.bf16.msra.mxu1 %v2953_v7  ;;  %v2770_v5 = vld [vmem:[%s3674_s3 + $0x108] ss:$16 sps:$4 sm:$0xff]   ;;  %v2773_v7 = vld [vmem:[%s3674_s3 + $0x100] ss:$16 sps:$4 sm:$0xff]  }
 0x149   :  { %2452 = vmatprep.subr.bf16.mxu0 %v2959_v8  ;;  %2474 = vmatprep.subr.bf16.mxu1 %v2971_v10  ;;  %v2775_v8 = vld [vmem:[%s3674_s3 + $0x104] ss:$16 sps:$4 sm:$0xff]  }
 0x14a   :  { %v2781_v10 = vld [vmem:[%s3674_s3 + $0x124] ss:$16 sps:$4 sm:$0xff]  }
 0x14c   :  { %2453 = vmatpush3.bf16.msra.mxu0 %v2965_v9  ;;  %2475 = vmatpush3.bf16.msra.mxu1 %v2977_v11  ;;  %v2778_v9 = vld [vmem:[%s3674_s3 + $0x12c] ss:$16 sps:$4 sm:$0xff]  }
 0x14d   :  { %2454 = vmatprep.subr.bf16.mxu0 %v2983_v12  ;;  %2476 = vmatprep.subr.bf16.mxu1 %v2995_v14 }
 0x150   :  { %2455 = vmatpush3.bf16.msra.mxu0 %v2989_v13  ;;  %2477 = vmatpush3.bf16.msra.mxu1 %v3001_v15 }
 0x151   :  { %2456 = vmatprep.subr.bf16.mxu0 %v3007_v16  ;;  %2478 = vmatprep.subr.bf16.mxu1 %v3019_v18 }
 0x154   :  { %2457 = vmatpush3.bf16.msra.mxu0 %v3013_v17  ;;  %2479 = vmatpush3.bf16.msra.mxu1 %v3025_v19 }
 0x155   :  { %2458 = vmatprep.subr.bf16.mxu0 %v3031_v20  ;;  %2480 = vmatprep.subr.bf16.mxu1 %v3043_v22 }
 0x158   :  { %2459 = vmatpush3.bf16.msra.mxu0 %v3037_v21  ;;  %2481 = vmatpush3.bf16.msra.mxu1 %v3049_v23 }
 0x159   :  { %2460 = vmatprep.subr.bf16.mxu0 %v3055_v24  ;;  %2482 = vmatprep.subr.bf16.mxu1 %v3067_v26 }
 0x15c   :  { %2461 = vmatpush3.bf16.msra.mxu0 %v3061_v25  ;;  %2483 = vmatpush3.bf16.msra.mxu1 %v3073_v27 }
 0x15d   :  { %2462 = vmatprep.subr.bf16.mxu0 %v3079_v28  ;;  %2484 = vmatprep.subr.bf16.mxu1 %v3091_v30 }
 0x160   :  { %2463 = vmatpush3.bf16.msra.mxu0 %v3085_v29  ;;  %2485 = vmatpush3.bf16.msra.mxu1 %v3105_v34 }
 0x161   :  { %2614 = vmatprep.subr.bf16.mxu0 %v2866_v33  ;;  %1319 = vmatprep.subr.bf16.mxu1 %v2772_v6 }
 0x163   :  { %1083 = vmatmul.mubr.bf16.vlgmr.msra.gmra.mrb[16].mxu0 %v2763_v1  ;;  %1124 = vmatmul.mubr.bf16.vlgmr.msra.gmra.mrb[16].mxu1 %v2766_v3 }
 0x164   :  { %2615 = vmatpush3.bf16.msra.mxu0 %v3117_v37  ;;  %2622 = vmatprep.mubr.msk.bf16.mxu0 %vm2867_vm0, %v2866_v33 }
 0x165   :  { %2616 = vmatprep.subr.bf16.mxu0 %v2866_v33  ;;  %1351 = vmatprep.mubr.bf16.mxu1 %v2868_v32 }
 0x166   :  { %1320 = vmatpush1.bf16.msra.mxu1 %v2770_v5 }
 0x167   :  { %1321 = vmatprep.subr.bf16.mxu1 %v2778_v9 }
 0x168   :  { %2617 = vmatpush3.bf16.msra.mxu0 %v3124_v38 }
 0x169   :  { %2618 = vmatprep.subr.bf16.mxu0 %v2866_v33 }
 0x16a   :  { %1322 = vmatpush1.bf16.msra.mxu1 %v2776_v31  ;;  %v2799_v31 = vld [vmem:[%s3673_s0 + $0x84] ss:$20 sps:$4 sm:$0xff]  }
 0x16b   :  { %1323 = vmatprep.subr.bf16.mxu1 %v2784_v58  ;;  %v2858_v58 = vld [vmem:[%s3672_s1 + $0x80] sm:$0xff]  }
 0x16c   :  { %2619 = vmatpush3.bf16.msra.mxu0 %v3138_v40 }
 0x16d   :  { %2620 = vmatprep.subr.bf16.mxu0 %v2866_v33 }
 0x16e   :  { %1324 = vmatpush1.bf16.msra.mxu1 %v2782_v59  ;;  %v2859_v59 = vld [vmem:[%s3672_s1 + $0x48] sm:$0xff]  }
 0x16f   :  { %1325 = vmatprep.subr.bf16.mxu1 %v2790_v62  ;;  %v2862_v62 = vld [vmem:[%s3672_s1 + $0x88] sm:$0xff]  }
 0x170   :  { %2621 = vmatpush3.bf16.msra.mxu0 %v3145_v41 }
 0x171   :  { %1276 = vmatprep.subr.bf16.mxu0 %v2775_v8 }
 0x172   :  { %1326 = vmatpush1.bf16.msra.mxu1 %v2788_v63  ;;  %v2863_v63 = vld [vmem:[%s3672_s1 + $0x50] sm:$0xff]  }
 0x173   :  { %2623 = vmatmul.mubr.msk.bf16.vlgmr.msra.gmra.mrb[20].mxu0 %vm353_vm1, %v2769_v4  ;;  %2497 = vmatprep.subr.bf16.mxu1 %v2912_v0 }
 0x174   :  { %1308 = vmatprep.mubr.bf16.mxu0 %v2868_v32  ;;  %1277 = vmatpush1.bf16.msra.mxu0 %v2773_v7 }
 0x175   :  { %1278 = vmatprep.subr.bf16.mxu0 %v2781_v10  ;;  %v2796_v10 = vld [vmem:[%s3673_s0 + $0x7c] ss:$20 sps:$4 sm:$0xff]  }
 0x178   :  { %1279 = vmatpush1.bf16.msra.mxu0 %v2779_v57  ;;  %v2857_v57 = vld [vmem:[%s3672_s1] sm:$0xff]  }
 0x179   :  { %1280 = vmatprep.subr.bf16.mxu0 %v2787_v60  ;;  %v2860_v60 = vld [vmem:[%s3672_s1 + $0xc8] sm:$0xff]  }
 0x17c   :  { %1281 = vmatpush1.bf16.msra.mxu0 %v2785_v61  ;;  %v2861_v61 = vld [vmem:[%s3672_s1 + $0x8] sm:$0xff]  }
 0x17d   :  { %1282 = vmatprep.subr.bf16.mxu0 %v2793_v35  ;;  %v2864_v35 = vld [vmem:[%s3672_s1 + $0xd0] sm:$0xff]  }
 0x180   :  { %1283 = vmatpush1.bf16.msra.mxu0 %v2791_v39  ;;  %v2865_v39 = vld [vmem:[%s3672_s1 + $0x10] sm:$0xff]  }
 0x181   :  { %2519 = vmatprep.subr.bf16.mxu0 %v2923_v2 }
 0x236   :  { %v2464_v42 = vpop.f32.mrb[16].mxu0  ;;  %v2486_v43 = vpop.f32.mrb[16].mxu1 }
 0x237   :  { %v2465_v44 = vpop.f32.mrb[17].mxu0  ;;  %v2487_v45 = vpop.f32.mrb[17].mxu1 }
 0x238   :  { %v2466_v47 = vadd.f32 %v2465_v44, %v2464_v42  ;;  %v2467_v48 = vpop.f32.mrb[18].mxu0  ;;  %v2488_v46 = vadd.f32 %v2487_v45, %v2486_v43  ;;  %v2489_v49 = vpop.f32.mrb[18].mxu1 }
 0x239   :  { %v2468_v50 = vpop.f32.mrb[19].mxu0  ;;  %v2490_v51 = vpop.f32.mrb[19].mxu1 }
 0x23a   :  { %v1085_v52 = vadd.f32 %v2466_v47, %v3264_v36  ;;  %v2469_v53 = vadd.f32 %v2468_v50, %v2467_v48  ;;  %v2491_v54 = vadd.f32 %v2490_v51, %v2489_v49 }
 0x23c   :  { %v1088_v55 = vadd.f32 %v2469_v53, %v3264_v36  ;;  %v1126_v56 = vadd.f32 %v2488_v46, %v1085_v52 }
 0x23e   :  { %v1129_v0 = vadd.f32 %v2491_v54, %v1088_v55 }
 0x246   :  { %v1166_v1 = vpop.f32.mrb[20].mxu0 }
 0x247   :  { %v1167_v2 = vadd.f32 %v1166_v1, %v1126_v56  ;;  %v2624_v3 = vpop.f32.mrb[21].mxu0 }
 0x248   :  { %v1169_v4 = vpop.f32.mrb[22].mxu0  ;;  %v2827_v3 = vld [vmem:[%s3676_s5] sm:$0xff]  }
 0x249   :  { %v1170_v5 = vadd.f32 %v1169_v4, %v1129_v0  ;;  %v2625_v6 = vpop.f32.mrb[23].mxu0  ;;  %v1173_v7 = vmax.f32 %v1167_v2, 0.0  ;;  %v2828_v4 = vld [vmem:[%s3676_s5 + $0x80] sm:$0xff]  }
 0x24a   :  { %v2830_v6 = vld [vmem:[%s3676_s5 + $0xc8] sm:$0xff]  }
 0x24b   :  { %v1174_v8 = vmax.f32 %v1170_v5, 0.0 }
 0x24d   :  { %v1175_v9 = vpack.c.bf16 %v1174_v8, %v1173_v7  ;;  %v2831_v7 = vld [vmem:[%s3676_s5 + $0x8] sm:$0xff]  }
 0x24e   :  { %v2832_v8 = vld [vmem:[%s3676_s5 + $0x88] sm:$0xff]  }
 0x24f   :  { %2269 = vmatmul.mubr.msk.bf16.vlgmr.msra.gmra.mrb[12].mxu0 %vm353_vm1, %v1175_v9  ;;  %2270 = vmatmul.mubr.msk.bf16.vlgmr.msra.gmra.mrb[12].mxu1 %vm353_vm1, %v1175_v9  ;;  %v2833_v9 = vld [vmem:[%s3676_s5 + $0x50] sm:$0xff]  }
 0x250   :  { %2498 = vmatpush3.bf16.msra.mxu1 %v2857_v57  ;;  %2520 = vmatpush3.bf16.msra.mxu0 %v2858_v58  ;;  %v2836_v57 = vld [vmem:[%s3676_s5 + $0x90] sm:$0xff]   ;;  %v2837_v58 = vld [vmem:[%s3676_s5 + $0x58] sm:$0xff]  }
 0x251   :  { %2499 = vmatprep.subr.bf16.mxu1 %v2859_v59  ;;  %2521 = vmatprep.subr.bf16.mxu0 %v2860_v60  ;;  %v2838_v59 = vld [vmem:[%s3676_s5 + $0xd8] sm:$0xff]  }
 0x252   :  { %1437 = vmatprep.mubr.bf16.mxu1 %v2796_v10  ;;  %1478 = vmatprep.mubr.bf16.mxu0 %v2799_v31  ;;  %v2834_v10 = vld [vmem:[%s3676_s5 + $0xd0] sm:$0xff]   ;;  %v2839_v60 = vld [vmem:[%s3676_s5 + $0x18] sm:$0xff]  }
 0x253   :  { %v2835_v31 = vld [vmem:[%s3676_s5 + $0x10] sm:$0xff]  }
 0x254   :  { %2500 = vmatpush3.bf16.msra.mxu1 %v2861_v61  ;;  %2522 = vmatpush3.bf16.msra.mxu0 %v2862_v62  ;;  %v2840_v61 = vld [vmem:[%s3676_s5 + $0x98] sm:$0xff]   ;;  %v2841_v62 = vld [vmem:[%s3676_s5 + $0x60] sm:$0xff]  }
 0x255   :  { %2501 = vmatprep.subr.bf16.mxu1 %v2863_v63  ;;  %2523 = vmatprep.subr.bf16.mxu0 %v2864_v35  ;;  %v2842_v63 = vld [vmem:[%s3676_s5 + $0xe0] sm:$0xff]  }
 0x256   :  { %v2843_v35 = vld [vmem:[%s3676_s5 + $0x20] sm:$0xff]  }
 0x258   :  { %2502 = vmatpush3.bf16.msra.mxu1 %v2865_v39  ;;  %2524 = vmatpush3.bf16.msra.mxu0 %v2977_v11  ;;  %v2794_v11 = vld [vmem:[%s3673_s0 + $0x78] ss:$20 sps:$4 sm:$0xff]   ;;  %v2844_v39 = vld [vmem:[%s3676_s5 + $0xa0] sm:$0xff]  }
 0x259   :  { %2503 = vmatprep.subr.bf16.mxu1 %v2983_v12  ;;  %2525 = vmatprep.subr.bf16.mxu0 %v2995_v14  ;;  %v2797_v12 = vld [vmem:[%s3673_s0 + $0x80] ss:$20 sps:$4 sm:$0xff]  }
 0x25a   :  { %v2801_v14 = vld [vmem:[%s3674_s3 + $0x180] ss:$16 sps:$4 sm:$0xff]  }
 0x25c   :  { %2504 = vmatpush3.bf16.msra.mxu1 %v2989_v13  ;;  %2526 = vmatpush3.bf16.msra.mxu0 %v3001_v15  ;;  %v2800_v13 = vld [vmem:[%s3673_s0 + $0x88] ss:$20 sps:$4 sm:$0xff]   ;;  %v2803_v15 = vld [vmem:[%s3674_s3 + $0x184] ss:$16 sps:$4 sm:$0xff]  }
 0x25d   :  { %2505 = vmatprep.subr.bf16.mxu1 %v3007_v16  ;;  %2527 = vmatprep.subr.bf16.mxu0 %v3019_v18  ;;  %v2804_v16 = vld [vmem:[%s3674_s3 + $0x188] ss:$16 sps:$4 sm:$0xff]   ;;  %v2809_v18 = vld [vmem:[%s3674_s3 + $0x1a4] ss:$16 sps:$4 sm:$0xff]  }
 0x260   :  { %2506 = vmatpush3.bf16.msra.mxu1 %v3013_v17  ;;  %2528 = vmatpush3.bf16.msra.mxu0 %v3025_v19  ;;  %v2806_v17 = vld [vmem:[%s3674_s3 + $0x18c] ss:$16 sps:$4 sm:$0xff]  }
 0x261   :  { %2507 = vmatprep.subr.bf16.mxu1 %v3031_v20  ;;  %2529 = vmatprep.subr.bf16.mxu0 %v3043_v22  ;;  %v2812_v19 = vld [vmem:[%s3674_s3 + $0x1ac] ss:$16 sps:$4 sm:$0xff]   ;;  %v2807_v20 = vld [vmem:[%s3674_s3 + $0x1a0] ss:$16 sps:$4 sm:$0xff]   ;;  %v2815_v22 = vld [vmem:[%s3674_s3 + $0x1c4] ss:$16 sps:$4 sm:$0xff]  }
 0x264   :  { %2508 = vmatpush3.bf16.msra.mxu1 %v3037_v21  ;;  %2530 = vmatpush3.bf16.msra.mxu0 %v3049_v23  ;;  %v2810_v21 = vld [vmem:[%s3674_s3 + $0x1a8] ss:$16 sps:$4 sm:$0xff]   ;;  %v2818_v23 = vld [vmem:[%s3674_s3 + $0x1cc] ss:$16 sps:$4 sm:$0xff]  }
 0x265   :  { %2509 = vmatprep.subr.bf16.mxu1 %v3055_v24  ;;  %2531 = vmatprep.subr.bf16.mxu0 %v3067_v26  ;;  %v2813_v24 = vld [vmem:[%s3674_s3 + $0x1c0] ss:$16 sps:$4 sm:$0xff]   ;;  %v2821_v26 = vld [vmem:[%s3674_s3 + $0x1e4] ss:$16 sps:$4 sm:$0xff]  }
 0x268   :  { %2510 = vmatpush3.bf16.msra.mxu1 %v3061_v25  ;;  %2532 = vmatpush3.bf16.msra.mxu0 %v3073_v27  ;;  %v2816_v25 = vld [vmem:[%s3674_s3 + $0x1c8] ss:$16 sps:$4 sm:$0xff]   ;;  %v2824_v27 = vld [vmem:[%s3674_s3 + $0x1ec] ss:$16 sps:$4 sm:$0xff]  }
 0x269   :  { %2511 = vmatprep.subr.bf16.mxu1 %v3079_v28  ;;  %2533 = vmatprep.subr.bf16.mxu0 %v3091_v30  ;;  %v2819_v28 = vld [vmem:[%s3674_s3 + $0x1e0] ss:$16 sps:$4 sm:$0xff]  }
 0x26a   :  { %v2825_v30 = vld [vmem:[%s3676_s5 + $0x40] sm:$0xff]  }
 0x26c   :  { %2512 = vmatpush3.bf16.msra.mxu1 %v3085_v29  ;;  %2534 = vmatpush3.bf16.msra.mxu0 %v3105_v34  ;;  %v2822_v29 = vld [vmem:[%s3674_s3 + $0x1e8] ss:$16 sps:$4 sm:$0xff]  }
 0x26d   :  { %2626 = vmatprep.subr.bf16.mxu1 %v2866_v33  ;;  %1631 = vmatprep.subr.bf16.mxu0 %v2803_v15  ;;  %v2849_v15 = vld [vmem:[%s3676_s5 + $0x70] sm:$0xff]  }
 0x26f   :  { %1438 = vmatmul.mubr.bf16.vlgmr.msra.gmra.mrb[20].mxu1 %v2794_v11  ;;  %1479 = vmatmul.mubr.bf16.vlgmr.msra.gmra.mrb[24].mxu0 %v2797_v12  ;;  %v2845_v11 = vld [vmem:[%s3676_s5 + $0x68] sm:$0xff]  }
 0x270   :  { %2627 = vmatpush3.bf16.msra.mxu1 %v3117_v37  ;;  %2634 = vmatprep.mubr.msk.bf16.mxu1 %vm2867_vm0, %v2866_v33  ;;  %v2846_v12 = vld [vmem:[%s3676_s5 + $0xe8] sm:$0xff]  }
 0x271   :  { %2628 = vmatprep.subr.bf16.mxu1 %v2866_v33  ;;  %1663 = vmatprep.mubr.bf16.mxu0 %v2868_v32 }
 0x272   :  { %1632 = vmatpush1.bf16.msra.mxu0 %v2801_v14  ;;  %v2848_v14 = vld [vmem:[%s3676_s5 + $0xa8] sm:$0xff]  }
 0x273   :  { %1633 = vmatprep.subr.bf16.mxu0 %v2809_v18  ;;  %v2852_v18 = vld [vmem:[%s3676_s5 + $0xb0] sm:$0xff]  }
 0x274   :  { %2629 = vmatpush3.bf16.msra.mxu1 %v3124_v38 }
 0x275   :  { %2630 = vmatprep.subr.bf16.mxu1 %v2866_v33 }
 0x276   :  { %1634 = vmatpush1.bf16.msra.mxu0 %v2807_v20  ;;  %v2854_v20 = vld [vmem:[%s3676_s5 + $0xf8] sm:$0xff]  }
 0x277   :  { %1635 = vmatprep.subr.bf16.mxu0 %v2815_v22  ;;  %v2856_v22 = vld [vmem:[%s3676_s5 + $0xb8] sm:$0xff]  }
 0x278   :  { %2631 = vmatpush3.bf16.msra.mxu1 %v3138_v40 }
 0x279   :  { %2632 = vmatprep.subr.bf16.mxu1 %v2866_v33  ;;  %v2826_v33 = vld [vmem:[%s3676_s5 + $0xc0] sm:$0xff]  }
 0x27a   :  { %1636 = vmatpush1.bf16.msra.mxu0 %v2813_v24 }
 0x27b   :  { %1637 = vmatprep.subr.bf16.mxu0 %v2821_v26 }
 0x27c   :  { %2633 = vmatpush3.bf16.msra.mxu1 %v3145_v41 }
 0x27d   :  { %1674 = vmatprep.subr.bf16.mxu1 %v2806_v17  ;;  %v2851_v17 = vld [vmem:[%s3676_s5 + $0x30] sm:$0xff]  }
 0x27e   :  { %1638 = vmatpush1.bf16.msra.mxu0 %v2819_v28 }
 0x27f   :  { %2635 = vmatmul.mubr.msk.bf16.vlgmr.msra.gmra.mrb[24].mxu1 %vm353_vm1, %v2800_v13  ;;  %2546 = vmatprep.subr.bf16.mxu0 %v2825_v30  ;;  %v2847_v13 = vld [vmem:[%s3676_s5 + $0x28] sm:$0xff]  }
 0x280   :  { %1706 = vmatprep.mubr.bf16.mxu1 %v2868_v32  ;;  %1675 = vmatpush1.bf16.msra.mxu1 %v2804_v16  ;;  %v2850_v16 = vld [vmem:[%s3676_s5 + $0xf0] sm:$0xff]  }
 0x281   :  { %1676 = vmatprep.subr.bf16.mxu1 %v2812_v19  ;;  %v2853_v19 = vld [vmem:[%s3676_s5 + $0x78] sm:$0xff]  }
 0x284   :  { %1677 = vmatpush1.bf16.msra.mxu1 %v2810_v21  ;;  %v2855_v21 = vld [vmem:[%s3676_s5 + $0x38] sm:$0xff]  }
 0x285   :  { %1678 = vmatprep.subr.bf16.mxu1 %v2818_v23  ;;  %v1727_v23 = vlaneseq }
 0x287   :  { %v1728_v24 = vshrl.u32 %v1727_v23, 7 }
 0x288   :  { %1679 = vmatpush1.bf16.msra.mxu1 %v2816_v25 }
 0x289   :  { %1680 = vmatprep.subr.bf16.mxu1 %v2824_v27  ;;  %v1729_v25 = vsub.s32 0, %v1728_v24  ;;  %v1737_v26 = vsub.s32 2, %v1728_v24  ;;  %v1725_v27 = vld [vmem:[%s3677_s4] sm:$0xf]  ;;  %v1733_v28 = vsub.s32 1, %v1728_v24 }
 0x28b   :  { %v1730_v30 = vrot.slane %v1725_v27, %v1729_v25 }
 0x28c   :  { %1681 = vmatpush1.bf16.msra.mxu1 %v2822_v29  ;;  %v1741_v29 = vsub.s32 3, %v1728_v24 }
 0x28d   :  { %2568 = vmatprep.subr.bf16.mxu1 %v2826_v33  ;;  %v1738_v33 = vrot.slane %v1725_v27, %v1737_v26 }
 0x342   :  { %v2513_v34 = vpop.f32.mrb[20].mxu1  ;;  %v2535_v37 = vpop.f32.mrb[24].mxu0 }
 0x343   :  { %v2514_v38 = vpop.f32.mrb[21].mxu1  ;;  %v2536_v40 = vpop.f32.mrb[25].mxu0 }
 0x344   :  { %v2515_v41 = vadd.f32 %v2514_v38, %v2513_v34  ;;  %v2516_v32 = vpop.f32.mrb[22].mxu1  ;;  %v2537_v42 = vadd.f32 %v2536_v40, %v2535_v37  ;;  %v2538_v43 = vpop.f32.mrb[26].mxu0  ;;  %v1734_v34 = vrot.slane %v1725_v27, %v1733_v28  ;;  %v1742_v37 = vrot.slane %v1725_v27, %v1741_v29 }
 0x345   :  { %v2517_v44 = vpop.f32.mrb[23].mxu1  ;;  %v2539_v45 = vpop.f32.mrb[27].mxu0 }
 0x346   :  { %v1440_v47 = vadd.f32 %v2515_v41, %v3264_v36  ;;  %v2518_v48 = vadd.f32 %v2517_v44, %v2516_v32  ;;  %v2540_v46 = vadd.f32 %v2539_v45, %v2538_v43 }
 0x348   :  { %v1443_v49 = vadd.f32 %v2518_v48, %v3264_v36  ;;  %v1481_v50 = vadd.f32 %v2537_v42, %v1440_v47  ;;  %v2829_v36 = vld [vmem:[%s3676_s5 + $0x48] sm:$0xff]  }
 0x34a   :  { %v1484_v51 = vadd.f32 %v2540_v46, %v1443_v49 }
 0x352   :  { %v1521_v52 = vpop.f32.mrb[24].mxu1 }
 0x353   :  { %v1522_v53 = vadd.f32 %v1521_v52, %v1481_v50  ;;  %v2636_v54 = vpop.f32.mrb[25].mxu1 }
 0x354   :  { %v1524_v55 = vpop.f32.mrb[26].mxu1 }
 0x355   :  { %v1525_v56 = vadd.f32 %v1524_v55, %v1484_v51  ;;  %v2637_v0 = vpop.f32.mrb[27].mxu1  ;;  %v1528_v1 = vmax.f32 %v1522_v53, 0.0 }
 0x357   :  { %v1529_v2 = vmax.f32 %v1525_v56, 0.0 }
 0x359   :  { %v1530_v5 = vpack.c.bf16 %v1529_v2, %v1528_v1 }
 0x35b   :  { %2315 = vmatmul.mubr.msk.bf16.vlgmr.msra.gmra.mrb[12].mxu0 %vm353_vm1, %v1530_v5  ;;  %2316 = vmatmul.mubr.msk.bf16.vlgmr.msra.gmra.mrb[12].mxu1 %vm353_vm1, %v1530_v5 }
 0x35c   :  { %2547 = vmatpush3.bf16.msra.mxu0 %v2827_v3  ;;  %2569 = vmatpush3.bf16.msra.mxu1 %v2828_v4 }
 0x35d   :  { %2548 = vmatprep.subr.bf16.mxu0 %v2829_v36  ;;  %2570 = vmatprep.subr.bf16.mxu1 %v2830_v6 }
 0x360   :  { %2549 = vmatpush3.bf16.msra.mxu0 %v2831_v7  ;;  %2571 = vmatpush3.bf16.msra.mxu1 %v2832_v8 }
 0x361   :  { %2550 = vmatprep.subr.bf16.mxu0 %v2833_v9  ;;  %2572 = vmatprep.subr.bf16.mxu1 %v2834_v10  ;;  %v2317_v10 = vld [vmem:[%s3678_s6] ss:$0 sm:$0xff] }
 0x364   :  { %2551 = vmatpush3.bf16.msra.mxu0 %v2835_v31  ;;  %2573 = vmatpush3.bf16.msra.mxu1 %v2836_v57 }
 0x365   :  { %2552 = vmatprep.subr.bf16.mxu0 %v2837_v58  ;;  %2574 = vmatprep.subr.bf16.mxu1 %v2838_v59 }
 0x368   :  { %2553 = vmatpush3.bf16.msra.mxu0 %v2839_v60  ;;  %2575 = vmatpush3.bf16.msra.mxu1 %v2840_v61 }
 0x369   :  { %2554 = vmatprep.subr.bf16.mxu0 %v2841_v62  ;;  %2576 = vmatprep.subr.bf16.mxu1 %v2842_v63 }
 0x36c   :  { %2555 = vmatpush3.bf16.msra.mxu0 %v2843_v35  ;;  %2577 = vmatpush3.bf16.msra.mxu1 %v2844_v39 }
 0x36d   :  { %2556 = vmatprep.subr.bf16.mxu0 %v2845_v11  ;;  %2578 = vmatprep.subr.bf16.mxu1 %v2846_v12 }
 0x370   :  { %2557 = vmatpush3.bf16.msra.mxu0 %v2847_v13  ;;  %2579 = vmatpush3.bf16.msra.mxu1 %v2848_v14 }
 0x371   :  { %2558 = vmatprep.subr.bf16.mxu0 %v2849_v15  ;;  %2580 = vmatprep.subr.bf16.mxu1 %v2850_v16 }
 0x374   :  { %2559 = vmatpush3.bf16.msra.mxu0 %v2851_v17  ;;  %2581 = vmatpush3.bf16.msra.mxu1 %v2852_v18 }
 0x375   :  { %2560 = vmatprep.subr.bf16.mxu0 %v2853_v19  ;;  %2582 = vmatprep.subr.bf16.mxu1 %v2854_v20 }
 0x378   :  { %2561 = vmatpush3.bf16.msra.mxu0 %v2855_v21  ;;  %2583 = vmatpush3.bf16.msra.mxu1 %v2856_v22 }
 0x42e   :  { %v1665_v38 = vpop.f32.mrb[12].mxu0  ;;  %v1708_v40 = vpop.f32.mrb[12].mxu1 }
 0x42f   :  { %v1747_v41 = vadd.f32 %v1730_v30, %v1665_v38  ;;  %v1749_v32 = vadd.f32 %v1738_v33, %v1708_v40  ;;  %v1667_v42 = vpop.f32.mrb[13].mxu0  ;;  %v1710_v43 = vpop.f32.mrb[13].mxu1 }
 0x430   :  { %v1748_v44 = vadd.f32 %v1734_v34, %v1667_v42  ;;  %v1750_v45 = vadd.f32 %v1742_v37, %v1710_v43  ;;  %v1669_v47 = vpop.f32.mrb[14].mxu0  ;;  %v1712_v48 = vpop.f32.mrb[14].mxu1 }
 0x431   :  { %v1751_v46 = vadd.f32 %v1730_v30, %v1669_v47  ;;  %v1753_v49 = vadd.f32 %v1738_v33, %v1712_v48  ;;  %v1671_v50 = vpop.f32.mrb[15].mxu0  ;;  %v1714_v51 = vpop.f32.mrb[15].mxu1  ;;  %v1755_v54 = vmax.f32 %v1747_v41, 0.0  ;;  %v1757_v55 = vmax.f32 %v1749_v32, 0.0 }
 0x432   :  { %v1752_v52 = vadd.f32 %v1734_v34, %v1671_v50  ;;  %v1754_v53 = vadd.f32 %v1742_v37, %v1714_v51  ;;  %v1756_v1 = vmax.f32 %v1748_v44, 0.0  ;;  %v1758_v2 = vmax.f32 %v1750_v45, 0.0 }
 0x433   :  { %v1759_v56 = vmax.f32 %v1751_v46, 0.0  ;;  %v1761_v0 = vmax.f32 %v1753_v49, 0.0 }
 0x434   :  { %v1760_v3 = vmax.f32 %v1752_v52, 0.0  ;;  %v1762_v4 = vmax.f32 %v1754_v53, 0.0 }
 0x435   :  { %v1763_v5 = vpack.c.bf16 %v1759_v56, %v1755_v54  ;;  %v1765_v36 = vpack.c.bf16 %v1761_v0, %v1757_v55 }
 0x436   :  { %v1764_v6 = vpack.c.bf16 %v1760_v3, %v1756_v1  ;;  %v1766_v7 = vpack.c.bf16 %v1762_v4, %v1758_v2 }
 0x438   :  { %2062 = vmatprep.mubr.bf16.mxu0 %v1764_v6  ;;  %2103 = vmatprep.mubr.bf16.mxu1 %v1766_v7 }
 0x439   :  { %2063 = vmatmul.mubr.bf16.vlgmr.msra.gmra.mrb[28].mxu0 %v1763_v5  ;;  %2104 = vmatmul.mubr.bf16.vlgmr.msra.gmra.mrb[28].mxu1 %v1765_v36 }
 0x50c   :  { %v2562_v8 = vpop.f32.mrb[28].mxu0  ;;  %v2584_v9 = vpop.f32.mrb[28].mxu1 }
 0x50d   :  { %v2563_v31 = vpop.f32.mrb[29].mxu0  ;;  %v2585_v57 = vpop.f32.mrb[29].mxu1 }
 0x50e   :  { %v2564_v58 = vadd.f32 %v2563_v31, %v2562_v8  ;;  %v2586_v59 = vadd.f32 %v2585_v57, %v2584_v9  ;;  %v2565_v60 = vpop.f32.mrb[30].mxu0  ;;  %v2587_v61 = vpop.f32.mrb[30].mxu1 }
 0x50f   :  { %v2566_v62 = vpop.f32.mrb[31].mxu0  ;;  %v2588_v63 = vpop.f32.mrb[31].mxu1 }
 0x510   :  { %v2065_v35 = vadd.f32 %v2564_v58, %v2317_v10  ;;  %v2567_v39 = vadd.f32 %v2566_v62, %v2565_v60  ;;  %v2589_v11 = vadd.f32 %v2588_v63, %v2587_v61 }
 0x512   :  { %v2106_v12 = vadd.f32 %v2586_v59, %v2065_v35  ;;  %v2068_v13 = vadd.f32 %v2567_v39, %v2317_v10 }
 0x514   :  { %2112 = vst [vmem:[%s3679_s7] sm:$0xff] %v2106_v12  ;;  %v2109_v14 = vadd.f32 %v2589_v11, %v2068_v13 }
 0x516   :  { %2113 = vst [vmem:[%s3679_s7 + $0x8] sm:$0xff] %v2109_v14 }

</bundles_post_ra>
